<compile_context>
chip_gen: v7x
topology: tpu7x:2x2x1
jax: 0.10.0
libtpu: 0.0.40
codegen_flags: <defaults>
</compile_context>

<pallas_src>
import functools

import jax
import jax.numpy as jnp
import numpy as np
from jax.experimental import pallas as pl
from jax.experimental.pallas import tpu as pltpu

EPS = 1e-5
_LANE = 128
_VMEM_LIMIT = 48 * 1024 * 1024
_VMEM_BUDGET = 36 * 1024 * 1024


def _round_up(v, m):
    return (v + m - 1) // m * m


def _pick_time_tile(block_t, Tp, B, Cip, Cp, K, stride, budget=_VMEM_BUDGET):
    """Largest output-time tile (multiple of 8) whose buffers fit the VMEM budget."""
    TT = max(8, min(_round_up(block_t, 8), _round_up(Tp, 8)))
    qmax = -(-K // stride)
    while TT > 8:
        tin = (TT + qmax - 1) * stride
        est = 4 * (2 * tin * B * Cip        # x double buffer
                   + tin * B * Cp           # staged h1 (phase-major)
                   + 2 * TT * B * Cp        # d output double buffer
                   + 2 * TT * B * Cp        # pass-2 input/output buffers (headroom)
                   + Cip * Cp + Cp * Cp)    # weights
        if est <= budget:
            break
        TT = max(8, _round_up(TT // 2, 8))
    return TT


# ---------------------------------------------------------------------------
# Pass 1: mask -> pointwise_conv1 -> depthwise conv -> (d, BN sum/sumsq accumulator)
# ---------------------------------------------------------------------------
def _pw1_dw_stats_kernel(x_hbm, w1_ref, wd_ref, bd_ref,
                         d_ref, stats_ref,
                         x_buf, h1_scr, dma_sem,
                         *, stride, K, TT, Tp, Qmax):
    i = pl.program_id(0)
    n = pl.num_programs(0)
    _, TIN, B, Cip = x_buf.shape
    Cp = d_ref.shape[-1]

    # -- manually double-buffered DMA of the (overlapping, haloed) input window --
    def x_copy(slot, idx):
        start = pl.multiple_of(idx * (TT * stride), 8)
        return pltpu.make_async_copy(
            x_hbm.at[pl.ds(start, TIN)], x_buf.at[slot], dma_sem.at[slot])

    slot = jax.lax.rem(i, 2)

    @pl.when(i == 0)
    def _():
        x_copy(0, 0).start()                      # prime first tile
        stats_ref[...] = jnp.zeros_like(stats_ref)

    @pl.when(i + 1 < n)
    def _():
        x_copy(1 - slot, i + 1).start()           # prefetch next tile

    x_copy(slot, i).wait()

    # -- pointwise_conv1 as one flat (TIN*B, Cip) @ (Cip, Cp) MXU matmul --
    # (pw1 bias is folded into bd_ref by the wrapper: bd_eff = bd + b1 * sum_k wd[k])
    xt = x_buf[slot]                                              # (TIN, B, Cip)
    h1 = jnp.dot(xt.reshape(TIN * B, Cip), w1_ref[...],
                 preferred_element_type=jnp.float32)
    # stage phase-major so depthwise taps become plain leading-axis ref loads:
    # h1_scr[u, r] == h1[u*stride + r]
    h1_scr[...] = h1.reshape(TT + Qmax - 1, stride, B, Cp)

    # -- depthwise conv: K taps, each an offset (unstrided) ref load --
    acc = jnp.broadcast_to(bd_ref[...], (TT, B, Cp))
    for q in range(Qmax):
        for r in range(stride):
            k = q * stride + r
            if k >= K:
                continue
            acc = acc + h1_scr[pl.ds(q, TT), r] * wd_ref[pl.ds(k, 1), :]
    d_ref[...] = acc

    # -- per-channel sum / sum-of-squares partials in one sweep (mask rows >= T') --
    rem = Tp - i * TT
    ridx = jax.lax.broadcasted_iota(jnp.int32, (TT, 1, 1), 0)
    dm = acc * (ridx < rem).astype(jnp.float32)
    s1 = jnp.sum(dm, axis=(0, 1), keepdims=True)                  # (1,1,Cp)
    s2 = jnp.sum(dm * dm, axis=(0, 1), keepdims=True)             # (1,1,Cp)
    row = jax.lax.broadcasted_iota(jnp.int32, (1, 8, Cp), 1)
    stats_ref[...] += (jnp.where(row == 0, s1, 0.0)
                       + jnp.where(row == 1, s2, 0.0))


# ---------------------------------------------------------------------------
# Pass 2: folded BatchNorm -> Swish -> pointwise_conv2 -> output-length mask
# ---------------------------------------------------------------------------
def _bn_swish_pw2_kernel(d_ref, scale_ref, shift_ref, w2_ref, b2_ref, len_ref,
                         out_ref, *, TT):
    i = pl.program_id(0)
    TTb, B, Cp = d_ref.shape
    y = d_ref[...] * scale_ref[...] + shift_ref[...]              # folded BN (one FMA)
    y = y * jax.nn.sigmoid(y)                                     # Swish
    h2 = jnp.dot(y.reshape(TTb * B, Cp), w2_ref[...],
                 preferred_element_type=jnp.float32) + b2_ref[...]
    h2 = h2.reshape(TTb, B, Cp)
    t_idx = jax.lax.broadcasted_iota(jnp.int32, (TTb, B, 1), 0) + i * TT
    keep = (t_idx < len_ref[...]).astype(jnp.float32)
    out_ref[...] = h2 * keep


@functools.partial(jax.jit, static_argnames=("stride", "eps", "block_t"))
def downsample_conv_module(x_tbc, mask_pad, params, *, stride=1, eps=EPS,
                           block_t=128):
    """x_tbc: (T, B, Cin) f32; mask_pad: (B, T) bool (True = padding).
    Returns (T', B, C), matching the PyTorch module's output."""
    T, B, Cin = x_tbc.shape
    C, K = params['wd'].shape                      # depthwise weight (C, K)
    Tp = (T - K) // stride + 1                     # output length

    Cp = _round_up(C, _LANE)
    Cip = _round_up(Cin, _LANE)
    TT = _pick_time_tile(block_t, Tp, B, Cip, Cp, K, stride)   # output-time tile
    GT = pl.cdiv(Tp, TT)
    Tp_pad = GT * TT
    Qmax = pl.cdiv(K, stride)                      # taps per stride-phase
    TIN = (TT + Qmax - 1) * stride                 # input frames per tile (with halo)
    T_x = max(T, (GT - 1) * TT * stride + TIN)     # padded input length

    f32 = jnp.float32
    # glue: zero padded frames, pad channels / time to lane / tile multiples
    x_m = jnp.where(mask_pad.T[:, :, None], 0.0, x_tbc.astype(f32))
    x_p = jnp.zeros((T_x, B, Cip), f32).at[:T, :, :Cin].set(x_m)

    # fold pw1 bias into an effective depthwise bias: bd_eff = bd + b1 * sum_k wd[:,k]
    bd_eff = params['bd'].astype(f32) + params['b1'].astype(f32) * jnp.sum(
        params['wd'].astype(f32), axis=1)

    w1p = jnp.zeros((Cip, Cp), f32).at[:Cin, :C].set(params['w1'].T.astype(f32))
    wdp = jnp.zeros((K, Cp), f32).at[:, :C].set(params['wd'].T.astype(f32))
    bdp = jnp.zeros((1, Cp), f32).at[0, :C].set(bd_eff)
    w2p = jnp.zeros((Cp, Cp), f32).at[:C, :C].set(params['w2'].T.astype(f32))
    b2p = jnp.zeros((1, Cp), f32).at[0, :C].set(params['b2'].astype(f32))
    gammap = jnp.zeros((Cp,), f32).at[:C].set(params['gamma'].astype(f32))
    betap = jnp.zeros((Cp,), f32).at[:C].set(params['beta'].astype(f32))

    # ---------------- pass 1 ----------------
    k1 = functools.partial(_pw1_dw_stats_kernel, stride=stride, K=K, TT=TT,
                           Tp=Tp, Qmax=Qmax)
    d_pad, stats = pl.pallas_call(
        k1,
        out_shape=(jax.ShapeDtypeStruct((Tp_pad, B, Cp), f32),
                   jax.ShapeDtypeStruct((1, 8, Cp), f32)),
        grid_spec=pltpu.PrefetchScalarGridSpec(
            num_scalar_prefetch=0,
            grid=(GT,),
            in_specs=[
                pl.BlockSpec(memory_space=pl.ANY),              # x: manual DMA (halo)
                pl.BlockSpec((Cip, Cp), lambda i: (0, 0)),      # w1
                pl.BlockSpec((K, Cp), lambda i: (0, 0)),        # wd
                pl.BlockSpec((1, Cp), lambda i: (0, 0)),        # bd (with b1 folded)
            ],
            out_specs=(
                pl.BlockSpec((TT, B, Cp), lambda i: (i, 0, 0)),   # d
                pl.BlockSpec((1, 8, Cp), lambda i: (0, 0, 0)),    # resident stats acc
            ),
            scratch_shapes=[
                pltpu.VMEM((2, TIN, B, Cip), f32),              # x double buffer
                pltpu.VMEM((TT + Qmax - 1, stride, B, Cp), f32),  # staged h1 (phase-major)
                pltpu.SemaphoreType.DMA((2,)),
            ]),
        compiler_params=pltpu.CompilerParams(
            dimension_semantics=("arbitrary",),   # sequential: cross-step x prefetch + stats acc
            vmem_limit_bytes=_VMEM_LIMIT),
    )(x_p, w1p, wdp, bdp)

    # ---- fold BatchNorm (training-mode batch stats) into per-channel scale/shift ----
    tot = stats[0]                                 # (8, Cp); row 0 = sum, row 1 = sumsq
    n_el = float(B * Tp)
    mean = tot[0] / n_el
    var = jnp.maximum(tot[1] / n_el - mean * mean, 0.0)   # clamp cancellation
    scale_v = gammap * jax.lax.rsqrt(var + eps)
    shift_v = betap - mean * scale_v
    scale = scale_v.reshape(1, Cp)
    shift = shift_v.reshape(1, Cp)

    # per-sequence output lengths (floor(valid / stride)), as in the PyTorch module
    len_out = (jnp.sum(~mask_pad, axis=-1) // stride).astype(jnp.int32)
    len_out = len_out.reshape(1, B, 1)

    # ---------------- pass 2 ----------------
    k2 = functools.partial(_bn_swish_pw2_kernel, TT=TT)
    out_pad = pl.pallas_call(
        k2,
        out_shape=jax.ShapeDtypeStruct((Tp_pad, B, Cp), f32),
        grid_spec=pltpu.PrefetchScalarGridSpec(
            num_scalar_prefetch=0,
            grid=(GT,),
            in_specs=[
                pl.BlockSpec((TT, B, Cp), lambda i: (i, 0, 0)),   # d
                pl.BlockSpec((1, Cp), lambda i: (0, 0)),          # BN scale
                pl.BlockSpec((1, Cp), lambda i: (0, 0)),          # BN shift
                pl.BlockSpec((Cp, Cp), lambda i: (0, 0)),         # w2
                pl.BlockSpec((1, Cp), lambda i: (0, 0)),          # b2
                pl.BlockSpec((1, B, 1), lambda i: (0, 0, 0)),     # output lengths
            ],
            out_specs=pl.BlockSpec((TT, B, Cp), lambda i: (i, 0, 0))),
        compiler_params=pltpu.CompilerParams(
            dimension_semantics=("parallel",),
            vmem_limit_bytes=_VMEM_LIMIT),
    )(d_pad, scale, shift, w2p, b2p, len_out)

    return out_pad[:Tp, :, :C]                     # (T', B, C)


# ---------------------------------------------------------------------------
# Pure-JAX transcription of the PyTorch forward (NCL layout), for checking.
# ---------------------------------------------------------------------------
def reference_forward(x_tbc, mask_pad, p, *, stride=1, eps=EPS):
    x = jnp.transpose(x_tbc, (1, 2, 0))                                # (B,Cin,T)
    x = jnp.where(mask_pad[:, None, :], 0.0, x)
    x = jnp.einsum('co,bot->bct', p['w1'], x) + p['b1'][None, :, None]
    B, C, T = x.shape
    K = p['wd'].shape[1]
    Tp = (T - K) // stride + 1
    acc = jnp.zeros((B, C, Tp), jnp.float32)
    for k in range(K):
        acc = acc + x[:, :, k:k + (Tp - 1) * stride + 1:stride] * p['wd'][:, k][None, :, None]
    x = acc + p['bd'][None, :, None]
    mean = jnp.mean(x, axis=(0, 2), keepdims=True)
    var = jnp.mean((x - mean) ** 2, axis=(0, 2), keepdims=True)
    x = (x - mean) / jnp.sqrt(var + eps) * p['gamma'][None, :, None] + p['beta'][None, :, None]
    x = x * jax.nn.sigmoid(x)
    x = jnp.einsum('cd,bdt->bct', p['w2'], x) + p['b2'][None, :, None]
    lengths = (jnp.sum(~mask_pad, axis=-1) / stride).astype(jnp.int32)
    out_mask = jnp.arange(Tp)[None, :] >= lengths[:, None]
    x = jnp.where(out_mask[:, None, :], 0.0, x)
    return jnp.transpose(x, (2, 0, 1))


if __name__ == "__main__":
    B, T, Cin, C, K = 2, 32, 8, 16, 15

    key = jax.random.PRNGKey(0)
    ks = jax.random.split(key, 10)
    x = jax.random.normal(ks[0], (T, B, Cin), jnp.float32)             # (time, batch, ch)
    params = {
        'w1': 0.2 * jax.random.normal(ks[1], (C, Cin), jnp.float32),   # pointwise_conv1.weight[:,:,0]
        'b1': 0.1 * jax.random.normal(ks[2], (C,), jnp.float32),
        'wd': 0.2 * jax.random.normal(ks[3], (C, K), jnp.float32),     # depthwise_conv.weight[:,0,:]
        'bd': 0.1 * jax.random.normal(ks[4], (C,), jnp.float32),
        'gamma': 1.0 + 0.1 * jax.random.normal(ks[5], (C,), jnp.float32),
        'beta': 0.1 * jax.random.normal(ks[6], (C,), jnp.float32),
        'w2': 0.2 * jax.random.normal(ks[7], (C, C), jnp.float32),     # pointwise_conv2.weight[:,:,0]
        'b2': 0.1 * jax.random.normal(ks[8], (C,), jnp.float32),
    }

    valid_lengths = jnp.array([18, 11], jnp.int32)                     # per-sequence valid frames
    mask_pad = jnp.arange(T)[None, :] >= valid_lengths[:, None]        # (B, T) bool, True = pad

    for stride in (1, 2):                                              # stride=2 exercises downsampling
        Tp = (T - K) // stride + 1
        out = downsample_conv_module(x, mask_pad, params, stride=stride,
                                     block_t=8)                        # small tile -> multi-step grid
        out = jax.block_until_ready(out)
        assert out.shape == (Tp, B, C), (stride, out.shape)
        ref = jax.block_until_ready(
            reference_forward(x, mask_pad, params, stride=stride))
        np.testing.assert_allclose(np.asarray(out), np.asarray(ref),
                                   rtol=1e-3, atol=1e-3)

    print("KERNEL_OK")
</pallas_src>

<mosaic_0001>
module attributes {stable_mosaic.version = 11 : i64} {
  func.func @_pw1_dw_stats_kernel(%arg0: i32, %arg1: memref<38x2x128xf32, #tpu.memory_space<any>>, %arg2: memref<128x128xf32, #tpu.memory_space<vmem>>, %arg3: memref<15x128xf32, #tpu.memory_space<vmem>>, %arg4: memref<1x128xf32, #tpu.memory_space<vmem>>, %arg5: memref<8x2x128xf32, #tpu.memory_space<vmem>>, %arg6: memref<1x8x128xf32, #tpu.memory_space<vmem>>, %arg7: memref<2x22x2x128xf32, #tpu.memory_space<vmem>>, %arg8: memref<22x1x2x128xf32, #tpu.memory_space<vmem>>, %arg9: memref<2x!tpu.dma_semaphore, #tpu.memory_space<semaphore_mem>>) attributes {dimension_semantics = [#tpu.dimension_semantics<arbitrary>], iteration_bounds = array<i64: 3>, scalar_prefetch = 0 : i64, scratch_operands = 3 : i64, tpu.core_type = #tpu.core_type<tc>, window_params = [{}, {pipeline_mode = #tpu.pipeline_mode<synchronous>, transform_indices = @transform_1, window_bounds = array<i64: 128, 128>}, {pipeline_mode = #tpu.pipeline_mode<synchronous>, transform_indices = @transform_2, window_bounds = array<i64: 15, 128>}, {pipeline_mode = #tpu.pipeline_mode<synchronous>, transform_indices = @transform_3, window_bounds = array<i64: 1, 128>}, {transform_indices = @transform_4, window_bounds = array<i64: 8, 2, 128>}, {pipeline_mode = #tpu.pipeline_mode<synchronous>, transform_indices = @transform_5, window_bounds = array<i64: 1, 8, 128>}]} {
    %c2_i32 = arith.constant 2 : i32
    %0 = arith.remsi %arg0, %c2_i32 : i32
    %c0_i32 = arith.constant 0 : i32
    %1 = arith.cmpi eq, %arg0, %c0_i32 : i32
    %2 = arith.extui %1 : i1 to i32
    %c0_i32_0 = arith.constant 0 : i32
    %3 = arith.cmpi ne, %2, %c0_i32_0 : i32
    scf.if %3 {
      %c0_i32_109 = arith.constant 0 : i32
      %163 = tpu.assume_multiple %c0_i32_109, 8 : i32
      %c0_i32_110 = arith.constant 0 : i32
      %c0_i32_111 = arith.constant 0 : i32
      %c0_i32_112 = arith.constant 0 : i32
      %c0_i32_113 = arith.constant 0 : i32
      %164 = tpu.memref_slice %arg1[%163, %c0_i32_112, %c0_i32_113] : memref<38x2x128xf32, #tpu.memory_space<any>> -> memref<22x2x128xf32, #tpu.memory_space<any>>
      %c0_i32_114 = arith.constant 0 : i32
      %c0_i32_115 = arith.constant 0 : i32
      %c0_i32_116 = arith.constant 0 : i32
      %165 = tpu.memref_slice %arg7[%c0_i32_110, %c0_i32_114, %c0_i32_115, %c0_i32_116] : memref<2x22x2x128xf32, #tpu.memory_space<vmem>> -> memref<1x22x2x128xf32, #tpu.memory_space<vmem>>
      %166 = tpu.memref_squeeze %165 : memref<1x22x2x128xf32, #tpu.memory_space<vmem>> -> memref<22x2x128xf32, #tpu.memory_space<vmem>>
      %167 = tpu.memref_slice %arg9[%c0_i32_111] : memref<2x!tpu.dma_semaphore, #tpu.memory_space<semaphore_mem>> -> memref<1x!tpu.dma_semaphore, #tpu.memory_space<semaphore_mem>>
      %168 = tpu.memref_squeeze %167 : memref<1x!tpu.dma_semaphore, #tpu.memory_space<semaphore_mem>> -> memref<!tpu.dma_semaphore, #tpu.memory_space<semaphore_mem>>
      tpu.enqueue_dma source(%164 : memref<22x2x128xf32, #tpu.memory_space<any>>) target(%166 : memref<22x2x128xf32, #tpu.memory_space<vmem>>) target_semaphore(%168 : memref<!tpu.dma_semaphore, #tpu.memory_space<semaphore_mem>>)
      %cst_117 = arith.constant 0.000000e+00 : f32
      %169 = vector.broadcast %cst_117 : f32 to vector<1x8x128xf32>
      %c0_118 = arith.constant 0 : index
      %c0_119 = arith.constant 0 : index
      %c0_120 = arith.constant 0 : index
      %170 = vector.load %arg6[%c0_118, %c0_119, %c0_120] : memref<1x8x128xf32, #tpu.memory_space<vmem>>, vector<1x8x128xf32>
      tpu.vector_store %arg6[%c0_118, %c0_119, %c0_120], %169 {strides = array<i32>} : memref<1x8x128xf32, #tpu.memory_space<vmem>>, vector<1x8x128xf32>,
    } else {
    }
    %c1_i32 = arith.constant 1 : i32
    %4 = arith.addi %arg0, %c1_i32 : i32
    %c3_i32 = arith.constant 3 : i32
    %5 = arith.cmpi slt, %4, %c3_i32 : i32
    %6 = arith.extui %5 : i1 to i32
    %c0_i32_1 = arith.constant 0 : i32
    %7 = arith.cmpi ne, %6, %c0_i32_1 : i32
    scf.if %7 {
      %c1_i32_109 = arith.constant 1 : i32
      %163 = arith.subi %c1_i32_109, %0 : i32
      %c1_i32_110 = arith.constant 1 : i32
      %164 = arith.addi %arg0, %c1_i32_110 : i32
      %c8_i32_111 = arith.constant 8 : i32
      %165 = arith.muli %164, %c8_i32_111 : i32
      %166 = tpu.assume_multiple %165, 8 : i32
      %c0_i32_112 = arith.constant 0 : i32
      %c0_i32_113 = arith.constant 0 : i32
      %167 = tpu.memref_slice %arg1[%166, %c0_i32_112, %c0_i32_113] : memref<38x2x128xf32, #tpu.memory_space<any>> -> memref<22x2x128xf32, #tpu.memory_space<any>>
      %c0_i32_114 = arith.constant 0 : i32
      %c0_i32_115 = arith.constant 0 : i32
      %c0_i32_116 = arith.constant 0 : i32
      %168 = tpu.memref_slice %arg7[%163, %c0_i32_114, %c0_i32_115, %c0_i32_116] : memref<2x22x2x128xf32, #tpu.memory_space<vmem>> -> memref<1x22x2x128xf32, #tpu.memory_space<vmem>>
      %169 = tpu.memref_squeeze %168 : memref<1x22x2x128xf32, #tpu.memory_space<vmem>> -> memref<22x2x128xf32, #tpu.memory_space<vmem>>
      %170 = tpu.memref_slice %arg9[%163] : memref<2x!tpu.dma_semaphore, #tpu.memory_space<semaphore_mem>> -> memref<1x!tpu.dma_semaphore, #tpu.memory_space<semaphore_mem>>
      %171 = tpu.memref_squeeze %170 : memref<1x!tpu.dma_semaphore, #tpu.memory_space<semaphore_mem>> -> memref<!tpu.dma_semaphore, #tpu.memory_space<semaphore_mem>>
      tpu.enqueue_dma source(%167 : memref<22x2x128xf32, #tpu.memory_space<any>>) target(%169 : memref<22x2x128xf32, #tpu.memory_space<vmem>>) target_semaphore(%171 : memref<!tpu.dma_semaphore, #tpu.memory_space<semaphore_mem>>)
    } else {
    }
    %c8_i32 = arith.constant 8 : i32
    %8 = arith.muli %arg0, %c8_i32 : i32
    %9 = tpu.assume_multiple %8, 8 : i32
    %c0_i32_2 = arith.constant 0 : i32
    %c0_i32_3 = arith.constant 0 : i32
    %10 = tpu.memref_slice %arg1[%9, %c0_i32_2, %c0_i32_3] : memref<38x2x128xf32, #tpu.memory_space<any>> -> memref<22x2x128xf32, #tpu.memory_space<any>>
    %c0_i32_4 = arith.constant 0 : i32
    %c0_i32_5 = arith.constant 0 : i32
    %c0_i32_6 = arith.constant 0 : i32
    %11 = tpu.memref_slice %arg7[%0, %c0_i32_4, %c0_i32_5, %c0_i32_6] : memref<2x22x2x128xf32, #tpu.memory_space<vmem>> -> memref<1x22x2x128xf32, #tpu.memory_space<vmem>>
    %12 = tpu.memref_squeeze %11 : memref<1x22x2x128xf32, #tpu.memory_space<vmem>> -> memref<22x2x128xf32, #tpu.memory_space<vmem>>
    %13 = tpu.memref_slice %arg9[%0] : memref<2x!tpu.dma_semaphore, #tpu.memory_space<semaphore_mem>> -> memref<1x!tpu.dma_semaphore, #tpu.memory_space<semaphore_mem>>
    %14 = tpu.memref_squeeze %13 : memref<1x!tpu.dma_semaphore, #tpu.memory_space<semaphore_mem>> -> memref<!tpu.dma_semaphore, #tpu.memory_space<semaphore_mem>>
    tpu.wait_dma2 semaphore(%14 : memref<!tpu.dma_semaphore, #tpu.memory_space<semaphore_mem>>) src(%10 : memref<22x2x128xf32, #tpu.memory_space<any>>) dst(%12 : memref<22x2x128xf32, #tpu.memory_space<vmem>>)
    %15 = arith.index_cast %0 : i32 to index
    %c0 = arith.constant 0 : index
    %c0_7 = arith.constant 0 : index
    %c0_8 = arith.constant 0 : index
    %16 = vector.load %arg7[%15, %c0, %c0_7, %c0_8] : memref<2x22x2x128xf32, #tpu.memory_space<vmem>>, vector<1x22x2x128xf32>
    %17 = vector.shape_cast %16 : vector<1x22x2x128xf32> to vector<22x2x128xf32>
    %18 = vector.shape_cast %17 : vector<22x2x128xf32> to vector<44x128xf32>
    %c0_9 = arith.constant 0 : index
    %c0_10 = arith.constant 0 : index
    %19 = vector.load %arg2[%c0_9, %c0_10] : memref<128x128xf32, #tpu.memory_space<vmem>>, vector<128x128xf32>
    %cst = arith.constant dense<0.000000e+00> : vector<44x128xf32>
    %20 = tpu.matmul %18, %19, %cst {dimension_numbers = #tpu.dot_dimension_numbers<[1], [0], [0], [1], [0, 0, 1, 1], [], []>} : vector<44x128xf32>, vector<128x128xf32>, vector<44x128xf32> -> vector<44x128xf32>
    %21 = vector.shape_cast %20 : vector<44x128xf32> to vector<22x1x2x128xf32>
    %c0_11 = arith.constant 0 : index
    %c0_12 = arith.constant 0 : index
    %c0_13 = arith.constant 0 : index
    %c0_14 = arith.constant 0 : index
    %22 = vector.load %arg8[%c0_11, %c0_12, %c0_13, %c0_14] : memref<22x1x2x128xf32, #tpu.memory_space<vmem>>, vector<22x1x2x128xf32>
    tpu.vector_store %arg8[%c0_11, %c0_12, %c0_13, %c0_14], %21 {strides = array<i32>} : memref<22x1x2x128xf32, #tpu.memory_space<vmem>>, vector<22x1x2x128xf32>,
    %c0_15 = arith.constant 0 : index
    %c0_16 = arith.constant 0 : index
    %23 = vector.load %arg4[%c0_15, %c0_16] : memref<1x128xf32, #tpu.memory_space<vmem>>, vector<1x128xf32>
    %24 = vector.shape_cast %23 : vector<1x128xf32> to vector<1x1x128xf32>
    %25 = vector.broadcast %24 : vector<1x1x128xf32> to vector<8x2x128xf32>
    %c0_17 = arith.constant 0 : index
    %c0_18 = arith.constant 0 : index
    %c0_19 = arith.constant 0 : index
    %c0_20 = arith.constant 0 : index
    %26 = vector.load %arg8[%c0_17, %c0_18, %c0_19, %c0_20] : memref<22x1x2x128xf32, #tpu.memory_space<vmem>>, vector<8x1x2x128xf32>
    %27 = vector.shape_cast %26 : vector<8x1x2x128xf32> to vector<8x2x128xf32>
    %c0_21 = arith.constant 0 : index
    %c0_22 = arith.constant 0 : index
    %28 = vector.load %arg3[%c0_21, %c0_22] : memref<15x128xf32, #tpu.memory_space<vmem>>, vector<1x128xf32>
    %29 = vector.shape_cast %28 : vector<1x128xf32> to vector<1x1x128xf32>
    %30 = vector.broadcast %29 : vector<1x1x128xf32> to vector<8x2x128xf32>
    %31 = arith.mulf %27, %30 : vector<8x2x128xf32>
    %32 = arith.addf %25, %31 : vector<8x2x128xf32>
    %c1 = arith.constant 1 : index
    %c0_23 = arith.constant 0 : index
    %c0_24 = arith.constant 0 : index
    %c0_25 = arith.constant 0 : index
    %33 = vector.load %arg8[%c1, %c0_23, %c0_24, %c0_25] : memref<22x1x2x128xf32, #tpu.memory_space<vmem>>, vector<8x1x2x128xf32>
    %34 = vector.shape_cast %33 : vector<8x1x2x128xf32> to vector<8x2x128xf32>
    %c1_26 = arith.constant 1 : index
    %c0_27 = arith.constant 0 : index
    %35 = vector.load %arg3[%c1_26, %c0_27] : memref<15x128xf32, #tpu.memory_space<vmem>>, vector<1x128xf32>
    %36 = vector.shape_cast %35 : vector<1x128xf32> to vector<1x1x128xf32>
    %37 = vector.broadcast %36 : vector<1x1x128xf32> to vector<8x2x128xf32>
    %38 = arith.mulf %34, %37 : vector<8x2x128xf32>
    %39 = arith.addf %32, %38 : vector<8x2x128xf32>
    %c2 = arith.constant 2 : index
    %c0_28 = arith.constant 0 : index
    %c0_29 = arith.constant 0 : index
    %c0_30 = arith.constant 0 : index
    %40 = vector.load %arg8[%c2, %c0_28, %c0_29, %c0_30] : memref<22x1x2x128xf32, #tpu.memory_space<vmem>>, vector<8x1x2x128xf32>
    %41 = vector.shape_cast %40 : vector<8x1x2x128xf32> to vector<8x2x128xf32>
    %c2_31 = arith.constant 2 : index
    %c0_32 = arith.constant 0 : index
    %42 = vector.load %arg3[%c2_31, %c0_32] : memref<15x128xf32, #tpu.memory_space<vmem>>, vector<1x128xf32>
    %43 = vector.shape_cast %42 : vector<1x128xf32> to vector<1x1x128xf32>
    %44 = vector.broadcast %43 : vector<1x1x128xf32> to vector<8x2x128xf32>
    %45 = arith.mulf %41, %44 : vector<8x2x128xf32>
    %46 = arith.addf %39, %45 : vector<8x2x128xf32>
    %c3 = arith.constant 3 : index
    %c0_33 = arith.constant 0 : index
    %c0_34 = arith.constant 0 : index
    %c0_35 = arith.constant 0 : index
    %47 = vector.load %arg8[%c3, %c0_33, %c0_34, %c0_35] : memref<22x1x2x128xf32, #tpu.memory_space<vmem>>, vector<8x1x2x128xf32>
    %48 = vector.shape_cast %47 : vector<8x1x2x128xf32> to vector<8x2x128xf32>
    %c3_36 = arith.constant 3 : index
    %c0_37 = arith.constant 0 : index
    %49 = vector.load %arg3[%c3_36, %c0_37] : memref<15x128xf32, #tpu.memory_space<vmem>>, vector<1x128xf32>
    %50 = vector.shape_cast %49 : vector<1x128xf32> to vector<1x1x128xf32>
    %51 = vector.broadcast %50 : vector<1x1x128xf32> to vector<8x2x128xf32>
    %52 = arith.mulf %48, %51 : vector<8x2x128xf32>
    %53 = arith.addf %46, %52 : vector<8x2x128xf32>
    %c4 = arith.constant 4 : index
    %c0_38 = arith.constant 0 : index
    %c0_39 = arith.constant 0 : index
    %c0_40 = arith.constant 0 : index
    %54 = vector.load %arg8[%c4, %c0_38, %c0_39, %c0_40] : memref<22x1x2x128xf32, #tpu.memory_space<vmem>>, vector<8x1x2x128xf32>
    %55 = vector.shape_cast %54 : vector<8x1x2x128xf32> to vector<8x2x128xf32>
    %c4_41 = arith.constant 4 : index
    %c0_42 = arith.constant 0 : index
    %56 = vector.load %arg3[%c4_41, %c0_42] : memref<15x128xf32, #tpu.memory_space<vmem>>, vector<1x128xf32>
    %57 = vector.shape_cast %56 : vector<1x128xf32> to vector<1x1x128xf32>
    %58 = vector.broadcast %57 : vector<1x1x128xf32> to vector<8x2x128xf32>
    %59 = arith.mulf %55, %58 : vector<8x2x128xf32>
    %60 = arith.addf %53, %59 : vector<8x2x128xf32>
    %c5 = arith.constant 5 : index
    %c0_43 = arith.constant 0 : index
    %c0_44 = arith.constant 0 : index
    %c0_45 = arith.constant 0 : index
    %61 = vector.load %arg8[%c5, %c0_43, %c0_44, %c0_45] : memref<22x1x2x128xf32, #tpu.memory_space<vmem>>, vector<8x1x2x128xf32>
    %62 = vector.shape_cast %61 : vector<8x1x2x128xf32> to vector<8x2x128xf32>
    %c5_46 = arith.constant 5 : index
    %c0_47 = arith.constant 0 : index
    %63 = vector.load %arg3[%c5_46, %c0_47] : memref<15x128xf32, #tpu.memory_space<vmem>>, vector<1x128xf32>
    %64 = vector.shape_cast %63 : vector<1x128xf32> to vector<1x1x128xf32>
    %65 = vector.broadcast %64 : vector<1x1x128xf32> to vector<8x2x128xf32>
    %66 = arith.mulf %62, %65 : vector<8x2x128xf32>
    %67 = arith.addf %60, %66 : vector<8x2x128xf32>
    %c6 = arith.constant 6 : index
    %c0_48 = arith.constant 0 : index
    %c0_49 = arith.constant 0 : index
    %c0_50 = arith.constant 0 : index
    %68 = vector.load %arg8[%c6, %c0_48, %c0_49, %c0_50] : memref<22x1x2x128xf32, #tpu.memory_space<vmem>>, vector<8x1x2x128xf32>
    %69 = vector.shape_cast %68 : vector<8x1x2x128xf32> to vector<8x2x128xf32>
    %c6_51 = arith.constant 6 : index
    %c0_52 = arith.constant 0 : index
    %70 = vector.load %arg3[%c6_51, %c0_52] : memref<15x128xf32, #tpu.memory_space<vmem>>, vector<1x128xf32>
    %71 = vector.shape_cast %70 : vector<1x128xf32> to vector<1x1x128xf32>
    %72 = vector.broadcast %71 : vector<1x1x128xf32> to vector<8x2x128xf32>
    %73 = arith.mulf %69, %72 : vector<8x2x128xf32>
    %74 = arith.addf %67, %73 : vector<8x2x128xf32>
    %c7 = arith.constant 7 : index
    %c0_53 = arith.constant 0 : index
    %c0_54 = arith.constant 0 : index
    %c0_55 = arith.constant 0 : index
    %75 = vector.load %arg8[%c7, %c0_53, %c0_54, %c0_55] : memref<22x1x2x128xf32, #tpu.memory_space<vmem>>, vector<8x1x2x128xf32>
    %76 = vector.shape_cast %75 : vector<8x1x2x128xf32> to vector<8x2x128xf32>
    %c7_56 = arith.constant 7 : index
    %c0_57 = arith.constant 0 : index
    %77 = vector.load %arg3[%c7_56, %c0_57] : memref<15x128xf32, #tpu.memory_space<vmem>>, vector<1x128xf32>
    %78 = vector.shape_cast %77 : vector<1x128xf32> to vector<1x1x128xf32>
    %79 = vector.broadcast %78 : vector<1x1x128xf32> to vector<8x2x128xf32>
    %80 = arith.mulf %76, %79 : vector<8x2x128xf32>
    %81 = arith.addf %74, %80 : vector<8x2x128xf32>
    %c8 = arith.constant 8 : index
    %c0_58 = arith.constant 0 : index
    %c0_59 = arith.constant 0 : index
    %c0_60 = arith.constant 0 : index
    %82 = vector.load %arg8[%c8, %c0_58, %c0_59, %c0_60] : memref<22x1x2x128xf32, #tpu.memory_space<vmem>>, vector<8x1x2x128xf32>
    %83 = vector.shape_cast %82 : vector<8x1x2x128xf32> to vector<8x2x128xf32>
    %c8_61 = arith.constant 8 : index
    %c0_62 = arith.constant 0 : index
    %84 = vector.load %arg3[%c8_61, %c0_62] : memref<15x128xf32, #tpu.memory_space<vmem>>, vector<1x128xf32>
    %85 = vector.shape_cast %84 : vector<1x128xf32> to vector<1x1x128xf32>
    %86 = vector.broadcast %85 : vector<1x1x128xf32> to vector<8x2x128xf32>
    %87 = arith.mulf %83, %86 : vector<8x2x128xf32>
    %88 = arith.addf %81, %87 : vector<8x2x128xf32>
    %c9 = arith.constant 9 : index
    %c0_63 = arith.constant 0 : index
    %c0_64 = arith.constant 0 : index
    %c0_65 = arith.constant 0 : index
    %89 = vector.load %arg8[%c9, %c0_63, %c0_64, %c0_65] : memref<22x1x2x128xf32, #tpu.memory_space<vmem>>, vector<8x1x2x128xf32>
    %90 = vector.shape_cast %89 : vector<8x1x2x128xf32> to vector<8x2x128xf32>
    %c9_66 = arith.constant 9 : index
    %c0_67 = arith.constant 0 : index
    %91 = vector.load %arg3[%c9_66, %c0_67] : memref<15x128xf32, #tpu.memory_space<vmem>>, vector<1x128xf32>
    %92 = vector.shape_cast %91 : vector<1x128xf32> to vector<1x1x128xf32>
    %93 = vector.broadcast %92 : vector<1x1x128xf32> to vector<8x2x128xf32>
    %94 = arith.mulf %90, %93 : vector<8x2x128xf32>
    %95 = arith.addf %88, %94 : vector<8x2x128xf32>
    %c10 = arith.constant 10 : index
    %c0_68 = arith.constant 0 : index
    %c0_69 = arith.constant 0 : index
    %c0_70 = arith.constant 0 : index
    %96 = vector.load %arg8[%c10, %c0_68, %c0_69, %c0_70] : memref<22x1x2x128xf32, #tpu.memory_space<vmem>>, vector<8x1x2x128xf32>
    %97 = vector.shape_cast %96 : vector<8x1x2x128xf32> to vector<8x2x128xf32>
    %c10_71 = arith.constant 10 : index
    %c0_72 = arith.constant 0 : index
    %98 = vector.load %arg3[%c10_71, %c0_72] : memref<15x128xf32, #tpu.memory_space<vmem>>, vector<1x128xf32>
    %99 = vector.shape_cast %98 : vector<1x128xf32> to vector<1x1x128xf32>
    %100 = vector.broadcast %99 : vector<1x1x128xf32> to vector<8x2x128xf32>
    %101 = arith.mulf %97, %100 : vector<8x2x128xf32>
    %102 = arith.addf %95, %101 : vector<8x2x128xf32>
    %c11 = arith.constant 11 : index
    %c0_73 = arith.constant 0 : index
    %c0_74 = arith.constant 0 : index
    %c0_75 = arith.constant 0 : index
    %103 = vector.load %arg8[%c11, %c0_73, %c0_74, %c0_75] : memref<22x1x2x128xf32, #tpu.memory_space<vmem>>, vector<8x1x2x128xf32>
    %104 = vector.shape_cast %103 : vector<8x1x2x128xf32> to vector<8x2x128xf32>
    %c11_76 = arith.constant 11 : index
    %c0_77 = arith.constant 0 : index
    %105 = vector.load %arg3[%c11_76, %c0_77] : memref<15x128xf32, #tpu.memory_space<vmem>>, vector<1x128xf32>
    %106 = vector.shape_cast %105 : vector<1x128xf32> to vector<1x1x128xf32>
    %107 = vector.broadcast %106 : vector<1x1x128xf32> to vector<8x2x128xf32>
    %108 = arith.mulf %104, %107 : vector<8x2x128xf32>
    %109 = arith.addf %102, %108 : vector<8x2x128xf32>
    %c12 = arith.constant 12 : index
    %c0_78 = arith.constant 0 : index
    %c0_79 = arith.constant 0 : index
    %c0_80 = arith.constant 0 : index
    %110 = vector.load %arg8[%c12, %c0_78, %c0_79, %c0_80] : memref<22x1x2x128xf32, #tpu.memory_space<vmem>>, vector<8x1x2x128xf32>
    %111 = vector.shape_cast %110 : vector<8x1x2x128xf32> to vector<8x2x128xf32>
    %c12_81 = arith.constant 12 : index
    %c0_82 = arith.constant 0 : index
    %112 = vector.load %arg3[%c12_81, %c0_82] : memref<15x128xf32, #tpu.memory_space<vmem>>, vector<1x128xf32>
    %113 = vector.shape_cast %112 : vector<1x128xf32> to vector<1x1x128xf32>
    %114 = vector.broadcast %113 : vector<1x1x128xf32> to vector<8x2x128xf32>
    %115 = arith.mulf %111, %114 : vector<8x2x128xf32>
    %116 = arith.addf %109, %115 : vector<8x2x128xf32>
    %c13 = arith.constant 13 : index
    %c0_83 = arith.constant 0 : index
    %c0_84 = arith.constant 0 : index
    %c0_85 = arith.constant 0 : index
    %117 = vector.load %arg8[%c13, %c0_83, %c0_84, %c0_85] : memref<22x1x2x128xf32, #tpu.memory_space<vmem>>, vector<8x1x2x128xf32>
    %118 = vector.shape_cast %117 : vector<8x1x2x128xf32> to vector<8x2x128xf32>
    %c13_86 = arith.constant 13 : index
    %c0_87 = arith.constant 0 : index
    %119 = vector.load %arg3[%c13_86, %c0_87] : memref<15x128xf32, #tpu.memory_space<vmem>>, vector<1x128xf32>
    %120 = vector.shape_cast %119 : vector<1x128xf32> to vector<1x1x128xf32>
    %121 = vector.broadcast %120 : vector<1x1x128xf32> to vector<8x2x128xf32>
    %122 = arith.mulf %118, %121 : vector<8x2x128xf32>
    %123 = arith.addf %116, %122 : vector<8x2x128xf32>
    %c14 = arith.constant 14 : index
    %c0_88 = arith.constant 0 : index
    %c0_89 = arith.constant 0 : index
    %c0_90 = arith.constant 0 : index
    %124 = vector.load %arg8[%c14, %c0_88, %c0_89, %c0_90] : memref<22x1x2x128xf32, #tpu.memory_space<vmem>>, vector<8x1x2x128xf32>
    %125 = vector.shape_cast %124 : vector<8x1x2x128xf32> to vector<8x2x128xf32>
    %c14_91 = arith.constant 14 : index
    %c0_92 = arith.constant 0 : index
    %126 = vector.load %arg3[%c14_91, %c0_92] : memref<15x128xf32, #tpu.memory_space<vmem>>, vector<1x128xf32>
    %127 = vector.shape_cast %126 : vector<1x128xf32> to vector<1x1x128xf32>
    %128 = vector.broadcast %127 : vector<1x1x128xf32> to vector<8x2x128xf32>
    %129 = arith.mulf %125, %128 : vector<8x2x128xf32>
    %130 = arith.addf %123, %129 : vector<8x2x128xf32>
    %c0_93 = arith.constant 0 : index
    %c0_94 = arith.constant 0 : index
    %c0_95 = arith.constant 0 : index
    %131 = vector.load %arg5[%c0_93, %c0_94, %c0_95] : memref<8x2x128xf32, #tpu.memory_space<vmem>>, vector<8x2x128xf32>
    tpu.vector_store %arg5[%c0_93, %c0_94, %c0_95], %130 {strides = array<i32>} : memref<8x2x128xf32, #tpu.memory_space<vmem>>, vector<8x2x128xf32>,
    %c8_i32_96 = arith.constant 8 : i32
    %132 = arith.muli %arg0, %c8_i32_96 : i32
    %c18_i32 = arith.constant 18 : i32
    %133 = arith.subi %c18_i32, %132 : i32
    %134 = tpu.iota {dimensions = array<i32: 0>} : vector<8x1x1xi32>
    %135 = vector.broadcast %133 : i32 to vector<8x1x1xi32>
    %136 = arith.cmpi slt, %134, %135 : vector<8x1x1xi32>
    %137 = arith.extui %136 : vector<8x1x1xi1> to vector<8x1x1xi32>
    %138 = arith.sitofp %137 : vector<8x1x1xi32> to vector<8x1x1xf32>
    %139 = vector.broadcast %138 : vector<8x1x1xf32> to vector<8x2x128xf32>
    %140 = arith.mulf %130, %139 : vector<8x2x128xf32>
    %cst_97 = arith.constant dense<0.000000e+00> : vector<128xf32>
    %141 = vector.multi_reduction <add>, %140, %cst_97 [0, 1] : vector<8x2x128xf32> to vector<128xf32>
    %142 = vector.shape_cast %141 : vector<128xf32> to vector<1x1x128xf32>
    %143 = arith.mulf %140, %140 : vector<8x2x128xf32>
    %cst_98 = arith.constant dense<0.000000e+00> : vector<128xf32>
    %144 = vector.multi_reduction <add>, %143, %cst_98 [0, 1] : vector<8x2x128xf32> to vector<128xf32>
    %145 = vector.shape_cast %144 : vector<128xf32> to vector<1x1x128xf32>
    %146 = tpu.iota {dimensions = array<i32: 1>} : vector<1x8x128xi32>
    %c0_99 = arith.constant 0 : index
    %c0_100 = arith.constant 0 : index
    %c0_101 = arith.constant 0 : index
    %147 = vector.load %arg6[%c0_99, %c0_100, %c0_101] : memref<1x8x128xf32, #tpu.memory_space<vmem>>, vector<1x8x128xf32>
    %c0_i32_102 = arith.constant 0 : i32
    %148 = vector.broadcast %c0_i32_102 : i32 to vector<1x8x128xi32>
    %149 = arith.cmpi eq, %146, %148 : vector<1x8x128xi32>
    %cst_103 = arith.constant 0.000000e+00 : f32
    %150 = vector.shape_cast %142 : vector<1x1x128xf32> to vector<1x1x128xf32>
    %151 = vector.broadcast %150 : vector<1x1x128xf32> to vector<1x8x128xf32>
    %152 = vector.broadcast %cst_103 : f32 to vector<1x8x128xf32>
    %153 = arith.select %149, %151, %152 : vector<1x8x128xi1>, vector<1x8x128xf32>
    %c1_i32_104 = arith.constant 1 : i32
    %154 = vector.broadcast %c1_i32_104 : i32 to vector<1x8x128xi32>
    %155 = arith.cmpi eq, %146, %154 : vector<1x8x128xi32>
    %cst_105 = arith.constant 0.000000e+00 : f32
    %156 = vector.shape_cast %145 : vector<1x1x128xf32> to vector<1x1x128xf32>
    %157 = vector.broadcast %156 : vector<1x1x128xf32> to vector<1x8x128xf32>
    %158 = vector.broadcast %cst_105 : f32 to vector<1x8x128xf32>
    %159 = arith.select %155, %157, %158 : vector<1x8x128xi1>, vector<1x8x128xf32>
    %160 = arith.addf %153, %159 : vector<1x8x128xf32>
    %161 = arith.addf %147, %160 : vector<1x8x128xf32>
    %c0_106 = arith.constant 0 : index
    %c0_107 = arith.constant 0 : index
    %c0_108 = arith.constant 0 : index
    %162 = vector.load %arg6[%c0_106, %c0_107, %c0_108] : memref<1x8x128xf32, #tpu.memory_space<vmem>>, vector<1x8x128xf32>
    tpu.vector_store %arg6[%c0_106, %c0_107, %c0_108], %161 {strides = array<i32>} : memref<1x8x128xf32, #tpu.memory_space<vmem>>, vector<1x8x128xf32>,
    return
  }
  func.func @transform_1(%arg0: i32) -> (i32, i32) {
    %c0_i32 = arith.constant 0 : i32
    %c0_i32_0 = arith.constant 0 : i32
    %c0_i32_1 = arith.constant 0 : i32
    return %c0_i32, %c0_i32_0 : i32, i32
  }
  func.func @transform_2(%arg0: i32) -> (i32, i32) {
    %c0_i32 = arith.constant 0 : i32
    %c0_i32_0 = arith.constant 0 : i32
    %c0_i32_1 = arith.constant 0 : i32
    return %c0_i32, %c0_i32_0 : i32, i32
  }
  func.func @transform_3(%arg0: i32) -> (i32, i32) {
    %c0_i32 = arith.constant 0 : i32
    %c0_i32_0 = arith.constant 0 : i32
    %c0_i32_1 = arith.constant 0 : i32
    return %c0_i32, %c0_i32_0 : i32, i32
  }
  func.func @transform_4(%arg0: i32) -> (i32, i32, i32) {
    %c0_i32 = arith.constant 0 : i32
    %c0_i32_0 = arith.constant 0 : i32
    %c0_i32_1 = arith.constant 0 : i32
    return %arg0, %c0_i32, %c0_i32_0 : i32, i32, i32
  }
  func.func @transform_5(%arg0: i32) -> (i32, i32, i32) {
    %c0_i32 = arith.constant 0 : i32
    %c0_i32_0 = arith.constant 0 : i32
    %c0_i32_1 = arith.constant 0 : i32
    %c0_i32_2 = arith.constant 0 : i32
    return %c0_i32, %c0_i32_0, %c0_i32_1 : i32, i32, i32
  }
}

module attributes {stable_mosaic.version = 11 : i64} {
  func.func @_bn_swish_pw2_kernel(%arg0: i32, %arg1: memref<8x2x128xf32, #tpu.memory_space<vmem>>, %arg2: memref<1x128xf32, #tpu.memory_space<vmem>>, %arg3: memref<1x128xf32, #tpu.memory_space<vmem>>, %arg4: memref<128x128xf32, #tpu.memory_space<vmem>>, %arg5: memref<1x128xf32, #tpu.memory_space<vmem>>, %arg6: memref<1x2x1xi32, #tpu.memory_space<vmem>>, %arg7: memref<8x2x128xf32, #tpu.memory_space<vmem>>) attributes {dimension_semantics = [#tpu.dimension_semantics<parallel>], iteration_bounds = array<i64: 3>, scalar_prefetch = 0 : i64, scratch_operands = 0 : i64, tpu.core_type = #tpu.core_type<tc>, window_params = [{transform_indices = @transform_0, window_bounds = array<i64: 8, 2, 128>}, {pipeline_mode = #tpu.pipeline_mode<synchronous>, transform_indices = @transform_1, window_bounds = array<i64: 1, 128>}, {pipeline_mode = #tpu.pipeline_mode<synchronous>, transform_indices = @transform_2, window_bounds = array<i64: 1, 128>}, {pipeline_mode = #tpu.pipeline_mode<synchronous>, transform_indices = @transform_3, window_bounds = array<i64: 128, 128>}, {pipeline_mode = #tpu.pipeline_mode<synchronous>, transform_indices = @transform_4, window_bounds = array<i64: 1, 128>}, {pipeline_mode = #tpu.pipeline_mode<synchronous>, transform_indices = @transform_5, window_bounds = array<i64: 1, 2, 1>}, {transform_indices = @transform_6, window_bounds = array<i64: 8, 2, 128>}]} {
    %c0 = arith.constant 0 : index
    %c0_0 = arith.constant 0 : index
    %c0_1 = arith.constant 0 : index
    %0 = vector.load %arg1[%c0, %c0_0, %c0_1] : memref<8x2x128xf32, #tpu.memory_space<vmem>>, vector<8x2x128xf32>
    %c0_2 = arith.constant 0 : index
    %c0_3 = arith.constant 0 : index
    %1 = vector.load %arg2[%c0_2, %c0_3] : memref<1x128xf32, #tpu.memory_space<vmem>>, vector<1x128xf32>
    %2 = vector.shape_cast %1 : vector<1x128xf32> to vector<1x1x128xf32>
    %3 = vector.broadcast %2 : vector<1x1x128xf32> to vector<8x2x128xf32>
    %4 = arith.mulf %0, %3 : vector<8x2x128xf32>
    %c0_4 = arith.constant 0 : index
    %c0_5 = arith.constant 0 : index
    %5 = vector.load %arg3[%c0_4, %c0_5] : memref<1x128xf32, #tpu.memory_space<vmem>>, vector<1x128xf32>
    %6 = vector.shape_cast %5 : vector<1x128xf32> to vector<1x1x128xf32>
    %7 = vector.broadcast %6 : vector<1x1x128xf32> to vector<8x2x128xf32>
    %8 = arith.addf %4, %7 : vector<8x2x128xf32>
    %9 = arith.negf %8 : vector<8x2x128xf32>
    %10 = math.exp %9 : vector<8x2x128xf32>
    %cst = arith.constant 1.000000e+00 : f32
    %11 = vector.broadcast %cst : f32 to vector<8x2x128xf32>
    %12 = arith.addf %11, %10 : vector<8x2x128xf32>
    %13 = arith.divf %11, %12 : vector<8x2x128xf32>
    %14 = arith.mulf %8, %13 : vector<8x2x128xf32>
    %15 = vector.shape_cast %14 : vector<8x2x128xf32> to vector<16x128xf32>
    %c0_6 = arith.constant 0 : index
    %c0_7 = arith.constant 0 : index
    %16 = vector.load %arg4[%c0_6, %c0_7] : memref<128x128xf32, #tpu.memory_space<vmem>>, vector<128x128xf32>
    %cst_8 = arith.constant dense<0.000000e+00> : vector<16x128xf32>
    %17 = tpu.matmul %15, %16, %cst_8 {dimension_numbers = #tpu.dot_dimension_numbers<[1], [0], [0], [1], [0, 0, 1, 1], [], []>} : vector<16x128xf32>, vector<128x128xf32>, vector<16x128xf32> -> vector<16x128xf32>
    %c0_9 = arith.constant 0 : index
    %c0_10 = arith.constant 0 : index
    %18 = vector.load %arg5[%c0_9, %c0_10] : memref<1x128xf32, #tpu.memory_space<vmem>>, vector<1x128xf32>
    %19 = vector.broadcast %18 : vector<1x128xf32> to vector<16x128xf32>
    %20 = arith.addf %17, %19 : vector<16x128xf32>
    %21 = vector.shape_cast %20 : vector<16x128xf32> to vector<8x2x128xf32>
    %22 = tpu.iota {dimensions = array<i32: 0>} : vector<8x2x1xi32>
    %c8_i32 = arith.constant 8 : i32
    %23 = arith.muli %arg0, %c8_i32 : i32
    %24 = vector.broadcast %23 : i32 to vector<8x2x1xi32>
    %25 = arith.addi %22, %24 : vector<8x2x1xi32>
    %c0_11 = arith.constant 0 : index
    %c0_12 = arith.constant 0 : index
    %c0_13 = arith.constant 0 : index
    %26 = vector.load %arg6[%c0_11, %c0_12, %c0_13] : memref<1x2x1xi32, #tpu.memory_space<vmem>>, vector<1x2x1xi32>
    %27 = vector.broadcast %26 : vector<1x2x1xi32> to vector<8x2x1xi32>
    %28 = arith.cmpi slt, %25, %27 : vector<8x2x1xi32>
    %29 = arith.extui %28 : vector<8x2x1xi1> to vector<8x2x1xi32>
    %30 = arith.sitofp %29 : vector<8x2x1xi32> to vector<8x2x1xf32>
    %31 = vector.broadcast %30 : vector<8x2x1xf32> to vector<8x2x128xf32>
    %32 = arith.mulf %21, %31 : vector<8x2x128xf32>
    %c0_14 = arith.constant 0 : index
    %c0_15 = arith.constant 0 : index
    %c0_16 = arith.constant 0 : index
    %33 = vector.load %arg7[%c0_14, %c0_15, %c0_16] : memref<8x2x128xf32, #tpu.memory_space<vmem>>, vector<8x2x128xf32>
    tpu.vector_store %arg7[%c0_14, %c0_15, %c0_16], %32 {strides = array<i32>} : memref<8x2x128xf32, #tpu.memory_space<vmem>>, vector<8x2x128xf32>,
    return
  }
  func.func @transform_0(%arg0: i32) -> (i32, i32, i32) {
    %c0_i32 = arith.constant 0 : i32
    %c0_i32_0 = arith.constant 0 : i32
    %c0_i32_1 = arith.constant 0 : i32
    return %arg0, %c0_i32, %c0_i32_0 : i32, i32, i32
  }
  func.func @transform_1(%arg0: i32) -> (i32, i32) {
    %c0_i32 = arith.constant 0 : i32
    %c0_i32_0 = arith.constant 0 : i32
    %c0_i32_1 = arith.constant 0 : i32
    return %c0_i32, %c0_i32_0 : i32, i32
  }
  func.func @transform_2(%arg0: i32) -> (i32, i32) {
    %c0_i32 = arith.constant 0 : i32
    %c0_i32_0 = arith.constant 0 : i32
    %c0_i32_1 = arith.constant 0 : i32
    return %c0_i32, %c0_i32_0 : i32, i32
  }
  func.func @transform_3(%arg0: i32) -> (i32, i32) {
    %c0_i32 = arith.constant 0 : i32
    %c0_i32_0 = arith.constant 0 : i32
    %c0_i32_1 = arith.constant 0 : i32
    return %c0_i32, %c0_i32_0 : i32, i32
  }
  func.func @transform_4(%arg0: i32) -> (i32, i32) {
    %c0_i32 = arith.constant 0 : i32
    %c0_i32_0 = arith.constant 0 : i32
    %c0_i32_1 = arith.constant 0 : i32
    return %c0_i32, %c0_i32_0 : i32, i32
  }
  func.func @transform_5(%arg0: i32) -> (i32, i32, i32) {
    %c0_i32 = arith.constant 0 : i32
    %c0_i32_0 = arith.constant 0 : i32
    %c0_i32_1 = arith.constant 0 : i32
    %c0_i32_2 = arith.constant 0 : i32
    return %c0_i32, %c0_i32_0, %c0_i32_1 : i32, i32, i32
  }
  func.func @transform_6(%arg0: i32) -> (i32, i32, i32) {
    %c0_i32 = arith.constant 0 : i32
    %c0_i32_0 = arith.constant 0 : i32
    %c0_i32_1 = arith.constant 0 : i32
    return %arg0, %c0_i32, %c0_i32_0 : i32, i32, i32
  }
}

</mosaic_0001>

<bundles_post_ra>
// kernel: downsample_conv_module.3
= control target key start
LH: loop header
LB: loop body
LE: loop exit
PB: predicated region body
PF: predicated region fallthrough
CT: control target
= control target key end

     0   :  { %s908_s21 = smov 0   ;;  %s1077_s0 = inlined_call_operand.vmem [shape: f32[24,2,128], index: 0, kind: input, shape index: {}]   ;;  %s1078_s1 = inlined_call_operand.vmem [shape: f32[1,128], index: 1, kind: input, shape index: {}]   ;;  %s1079_s2 = inlined_call_operand.vmem [shape: f32[1,128], index: 2, kind: input, shape index: {}]   ;;  %s1080_s3 = inlined_call_operand.vmem [shape: f32[128,128], index: 3, kind: input, shape index: {}]   ;;  %s1081_s4 = inlined_call_operand.vmem [shape: f32[1,128], index: 4, kind: input, shape index: {}]   ;;  %s1082_s5 = inlined_call_operand.vmem [shape: s32[1,2,1], index: 5, kind: input, shape index: {}]   ;;  %s1083_s6 = inlined_call_operand.vmem [shape: f32[24,2,128], index: 6, kind: output, shape index: {}]  }
   0x1 LB: > { %s681_s22 = sadd.s32 4294967295, %s868_s21   ;;  %p685_p0 = scmp.ge.s32.totalorder %s868_s21, 1  ;;  %s868_s21 = sphi %s908_s21, %s16_s21  }
   0x2   : > { %p213_p1 = scmp.lt.s32.totalorder %s868_s21, 4 }
   0x4   : > { %p214_p2 = pnand %p685_p0, %p213_p1 }
   0x5   : > { %v349_v0 = vld [vmem:[%s1080_s3] sm:$0xff] (!%p214_p2)  ;;  %v350_v1 = vld [vmem:[%s1080_s3 + $0x8] sm:$0xff] (!%p214_p2)  ;;  %v351_v2 = vld [vmem:[%s1080_s3 + $0x10] sm:$0xff] (!%p214_p2)  ;;  %s686_s29 = sshll.u32 (!%p214_p2), %s681_s22, 3  ;;  %v870_v12 = vmov (!%p214_p2), 0   ;;  %v871_v44 = vmov (!%p214_p2), 0.0  }
   0x6   : > { %217 = sbr.rel (%p214_p2) target bundleno = 286 (0x11e), region = 44  ;;  %v765_v3 = vpack.c.bf16 (!%p214_p2), %v350_v1, %v349_v0  ;;  %v352_v4 = vld [vmem:[%s1080_s3 + $0x18] sm:$0xff] (!%p214_p2)  ;;  %v353_v5 = vld [vmem:[%s1080_s3 + $0x20] sm:$0xff] (!%p214_p2)  ;;  %v354_v6 = vld [vmem:[%s1080_s3 + $0x28] sm:$0xff] (!%p214_p2)  ;;  %p244_p3 = scmp.lt.s32.totalorder (!%p214_p2), %s686_s29, 23  ;;  %v934_v7 = vstv (!%p214_p2), %s686_s29  ;;  %819 = vset.pattern.permute.xlu1 (!%p214_p2), %v870_v12  ;;  %808 = vset.pattern.permute.xlu0 (!%p214_p2), %v870_v12 }
   0x7   : > { %v769_v8 = vpack.c.bf16 (!%p214_p2), %v352_v4, %v351_v2  ;;  %v355_v9 = vld [vmem:[%s1080_s3 + $0x30] sm:$0xff] (!%p214_p2)  ;;  %v356_v10 = vld [vmem:[%s1080_s3 + $0x38] sm:$0xff] (!%p214_p2)  ;;  %v357_v11 = vld [vmem:[%s1080_s3 + $0x40] sm:$0xff] (!%p214_p2)  ;;  %v540_v16 = vadd.s32 (!%p214_p2), 4, %v934_v7  ;;  %v541_v17 = vadd.s32 (!%p214_p2), 5, %v934_v7  ;;  %v959_v18 = vadd.s32 (!%p214_p2), 1, %v934_v7 }
   0x8   : > { %766 = vmatprep.subr.bf16.mxu0 (!%p214_p2), %v765_v3  ;;  %v358_v13 = vld [vmem:[%s1080_s3 + $0x48] sm:$0xff] (!%p214_p2)  ;;  %v359_v14 = vld [vmem:[%s1080_s3 + $0x50] sm:$0xff] (!%p214_p2)  ;;  %v360_v15 = vld [vmem:[%s1080_s3 + $0x58] sm:$0xff] (!%p214_p2)  ;;  %v962_v19 = vadd.s32 (!%p214_p2), 6, %v934_v7  ;;  %v773_v20 = vpack.c.bf16 (!%p214_p2), %v354_v6, %v353_v5  ;;  %v777_v21 = vpack.c.bf16 (!%p214_p2), %v356_v10, %v355_v9  ;;  %v543_v27 = vadd.s32 (!%p214_p2), 7, %v934_v7 }
   0x9   : > { %768 = vmatpush3.bf16.msra.mxu0 (!%p214_p2), %v765_v3  ;;  %v964_v22 = vpack.c.bf16 (!%p214_p2), %v358_v13, %v357_v11  ;;  %v690_v23 = vld [vmem:[%s1078_s1] ss:$0 sm:$0xff] (!%p214_p2)  ;;  %v973_v25 = vpack.c.bf16 (!%p214_p2), %v360_v15, %v359_v14  ;;  %v987_v28 = vadd.s32 (!%p214_p2), 2, %v934_v7  ;;  %v990_v29 = vadd.s32 (!%p214_p2), 3, %v934_v7  ;;  %v363_v14 = vld [vmem:[%s1080_s3 + $0x70] sm:$0xff] (!%p214_p2)  ;;  %v364_v15 = vld [vmem:[%s1080_s3 + $0x78] sm:$0xff] (!%p214_p2) }
   0xa   : > { %770 = vmatprep.subr.bf16.mxu0 (!%p214_p2), %v769_v8  ;;  %v691_v24 = vld [vmem:[%s1079_s2] ss:$0 sm:$0xff] (!%p214_p2) }
   0xb   : > { %v983_v26 = vld [vmem:[%s1082_s5] sm:$0x3] (!%p214_p2) }
   0xc   : > { %vm549_vm0 = vcmp.lt.s32.totalorder (!%p214_p2), %v540_v16, %v983_v26  ;;  %vm550_vm1 = vcmp.lt.s32.totalorder (!%p214_p2), %v541_v17, %v983_v26  ;;  %vm545_vm2 = vcmp.lt.s32.totalorder (!%p214_p2), %v934_v7, %v983_v26  ;;  %vm546_vm3 = vcmp.lt.s32.totalorder (!%p214_p2), %v959_v18, %v983_v26  ;;  %v361_v7 = vld [vmem:[%s1080_s3 + $0x60] sm:$0xff] (!%p214_p2) }
   0xd   : > { %s1085_s29 = smov (!%p244_p3, %s686_s29), 23  ;;  %772 = vmatpush3.bf16.msra.mxu0 %v769_v8  ;;  %vm551_vm4 = vcmp.lt.s32.totalorder %v962_v19, %v983_v26  ;;  %v706_v45 = vsel %vm549_vm0, 1.0, %v871_v44  ;;  %v707_v63 = vsel %vm550_vm1, 1.0, %v871_v44  ;;  %v702_v0 = vsel %vm545_vm2, 1.0, %v871_v44  ;;  %v362_v8 = vld [vmem:[%s1080_s3 + $0x68] sm:$0xff] }
   0xe   : > { %s687_s25 = sshll.u32 %s1085_s29, 1  ;;  %774 = vmatprep.subr.bf16.mxu0 %v773_v20  ;;  %v820_v2 = vpack.i.bf16 %v707_v63, %v706_v45  ;;  %v703_v3 = vsel %vm546_vm3, 1.0, %v871_v44  ;;  %vm552_vm5 = vcmp.lt.s32.totalorder %v543_v27, %v983_v26  ;;  %v708_v5 = vsel %vm551_vm4, 1.0, %v871_v44 }
   0xf   : > { %s247_s9 = scalar_lea.vmem %s1077_s0, %s687_s25  ;;  %v809_v4 = vpack.i.bf16 %v703_v3, %v702_v0  ;;  %v709_v6 = vsel %vm552_vm5, 1.0, %v871_v44  ;;  %vm547_vm6 = vcmp.lt.s32.totalorder %v987_v28, %v983_v26  ;;  %vm548_vm7 = vcmp.lt.s32.totalorder %v990_v29, %v983_v26  ;;  %s253_s26 = scalar_lea.vmem %s1083_s6, %s687_s25 }
  0x10   : > { %v255_v30 = vld [vmem:[%s247_s9] sm:$0x3]  ;;  %v256_v31 = vld [vmem:[%s247_s9 + $0x2] sm:$0x3]  ;;  %v257_v32 = vld [vmem:[%s247_s9 + $0x4] sm:$0x3]  ;;  %821 = vperm.xlu1 %819, %v820_v2   ;;  %v825_v9 = vpack.i.bf16 %v709_v6, %v708_v5  ;;  %v789_v13 = vpack.c.bf16 %v362_v8, %v361_v7  ;;  %v793_v18 = vpack.c.bf16 %v364_v15, %v363_v14 }
  0x11   : > { %v258_v33 = vld [vmem:[%s247_s9 + $0x6] sm:$0x3]  ;;  %v270_v34 = vmul.f32 %v690_v23, %v255_v30  ;;  %v271_v35 = vmul.f32 %v690_v23, %v256_v31  ;;  %v272_v36 = vmul.f32 %v690_v23, %v257_v32  ;;  %v259_v37 = vld [vmem:[%s247_s9 + $0x8] sm:$0x3]  ;;  %v260_v38 = vld [vmem:[%s247_s9 + $0xa] sm:$0x3]  ;;  %776 = vmatpush3.bf16.msra.mxu0 %v773_v20  ;;  %810 = vperm.xlu0 %808, %v809_v4  }
  0x12   : > { %v273_v39 = vmul.f32 %v690_v23, %v258_v33  ;;  %v261_v40 = vld [vmem:[%s247_s9 + $0xc] sm:$0x3]  ;;  %v262_v41 = vld [vmem:[%s247_s9 + $0xe] sm:$0x3]  ;;  %v274_v42 = vmul.f32 %v690_v23, %v259_v37  ;;  %v275_v43 = vmul.f32 %v690_v23, %v260_v38  ;;  %778 = vmatprep.subr.bf16.mxu0 %v777_v21  ;;  %v704_v10 = vsel %vm547_vm6, 1.0, %v871_v44 }
  0x13   : > { %v1002_v46 = vadd.f32 %v691_v24, %v270_v34  ;;  %v1004_v47 = vadd.f32 %v691_v24, %v271_v35  ;;  %v1006_v48 = vadd.f32 %v691_v24, %v272_v36  ;;  %v276_v49 = vmul.f32 %v690_v23, %v261_v40 }
  0x14   : > { %v1008_v50 = vadd.f32 %v691_v24, %v273_v39  ;;  %v277_v51 = vmul.f32 %v690_v23, %v262_v41  ;;  %v1010_v52 = vadd.f32 %v691_v24, %v274_v42  ;;  %v1012_v53 = vadd.f32 %v691_v24, %v275_v43  ;;  %826 = vperm.xlu1 %819, %v825_v9  }
  0x15   : > { %v692_v54 = vmul.f32 -1.442695, %v1002_v46  ;;  %v693_v55 = vmul.f32 -1.442695, %v1004_v47  ;;  %v694_v56 = vmul.f32 -1.442695, %v1006_v48  ;;  %v1017_v57 = vadd.f32 %v691_v24, %v276_v49  ;;  %780 = vmatpush3.bf16.msra.mxu0 %v777_v21 }
  0x16   : > { %v695_v58 = vmul.f32 -1.442695, %v1008_v50  ;;  %v1020_v59 = vadd.f32 %v691_v24, %v277_v51  ;;  %v696_v60 = vmul.f32 -1.442695, %v1010_v52  ;;  %v697_v61 = vmul.f32 -1.442695, %v1012_v53  ;;  %782 = vmatprep.subr.bf16.mxu0 %v964_v22 }
  0x17   : > { %830 = vpow2.f32 %v692_v54  ;;  %v698_v62 = vmul.f32 -1.442695, %v1017_v57  ;;  %v705_v11 = vsel %vm548_vm7, 1.0, %v871_v44  ;;  %v872_v31 = vmov 1983009808  }
  0x18   : > { %832 = vpow2.f32 %v693_v55  ;;  %v699_v1 = vmul.f32 -1.442695, %v1020_v59  ;;  %v814_v12 = vpack.i.bf16 %v705_v11, %v704_v10  ;;  %v383_v32 = vunpack.c.l.s4 %v872_v31 }
  0x19   : > { %834 = vpow2.f32 %v694_v56  ;;  %784 = vmatpush3.bf16.msra.mxu0 %v964_v22  ;;  %v385_v33 = vlaneseq }
  0x1a   : > { %836 = vpow2.f32 %v695_v58  ;;  %786 = vmatprep.subr.bf16.mxu0 %v973_v25  ;;  %815 = vperm.xlu0 %808, %v814_v12   ;;  %v384_v36 = vunpack.c.0.s8 %v383_v32 }
  0x1b   : > { %838 = vpow2.f32 %v696_v60  ;;  %v386_v37 = vshrl.u32 %v385_v33, 7 }
  0x1c   : > { %840 = vpow2.f32 %v697_v61 }
  0x1d   : > { %842 = vpow2.f32 %v698_v62  ;;  %788 = vmatpush3.bf16.msra.mxu0 %v973_v25  ;;  %v387_v43 = vsub.s32 %v384_v36, %v386_v37 }
  0x1e   : > { %844 = vpow2.f32 %v699_v1  ;;  %790 = vmatprep.subr.bf16.mxu0 %v789_v13 }
  0x21   : > { %v831_v16 = vpop.eup %830  ;;  %792 = vmatpush3.bf16.msra.mxu0 %v789_v13 }
  0x22   : > { %v833_v17 = vpop.eup %832  ;;  %v317_v19 = vadd.f32 1.0, %v831_v16  ;;  %794 = vmatprep.subr.bf16.mxu0 %v793_v18 }
  0x23   : > { %v835_v20 = vpop.eup %834  ;;  %v318_v21 = vadd.f32 1.0, %v833_v17 }
  0x24   : > { %v837_v22 = vpop.eup %836  ;;  %v319_v23 = vadd.f32 1.0, %v835_v20  ;;  %846 = vrcp.f32 %v317_v19 }
  0x25   : > { %v839_v24 = vpop.eup %838  ;;  %v320_v26 = vadd.f32 1.0, %v837_v22  ;;  %848 = vrcp.f32 %v318_v21  ;;  %796 = vmatpush3.bf16.msra.mxu0 %v793_v18 }
  0x26   : > { %v841_v27 = vpop.eup %840  ;;  %850 = vrcp.f32 %v319_v23  ;;  %v321_v28 = vadd.f32 1.0, %v839_v24 }
  0x27   : > { %v843_v29 = vpop.eup %842  ;;  %852 = vrcp.f32 %v320_v26  ;;  %v322_v25 = vadd.f32 1.0, %v841_v27 }
  0x28   : > { %v845_v30 = vpop.eup %844  ;;  %v323_v34 = vadd.f32 1.0, %v843_v29  ;;  %854 = vrcp.f32 %v321_v28 }
  0x29   : > { %v324_v35 = vadd.f32 1.0, %v845_v30  ;;  %856 = vrcp.f32 %v322_v25 }
  0x2a   : > { %858 = vrcp.f32 %v323_v34 }
  0x2b   : > { %860 = vrcp.f32 %v324_v35 }
  0x2e   : > { %v847_v38 = vpop.eup %846 }
  0x2f   : > { %v849_v39 = vpop.eup %848  ;;  %v341_v40 = vmul.f32 %v847_v38, %v1002_v46 }
  0x30   : > { %v851_v41 = vpop.eup %850  ;;  %v342_v42 = vmul.f32 %v849_v39, %v1004_v47 }
  0x31   : > { %v853_v44 = vpop.eup %852  ;;  %v343_v45 = vmul.f32 %v851_v41, %v1006_v48 }
  0x32   : > { %v855_v49 = vpop.eup %854  ;;  %v344_v51 = vmul.f32 %v853_v44, %v1008_v50  ;;  %v380_v54 = vcombine.low %v341_v40, %v342_v42 }
  0x33   : > { %v857_v55 = vpop.eup %856  ;;  %v345_v56 = vmul.f32 %v855_v49, %v1010_v52 }
  0x34   : > { %v859_v58 = vpop.eup %858  ;;  %v381_v60 = vcombine.low %v343_v45, %v344_v51  ;;  %v388_v61 = vrot.slane %v380_v54, %v387_v43  ;;  %v346_v62 = vmul.f32 %v857_v55, %v1012_v53  ;;  %v700_v53 = vld [vmem:[%s1081_s4] ss:$0 sm:$0xff] }
  0x35   : > { %v861_v46 = vpop.eup %860  ;;  %v347_v63 = vmul.f32 %v859_v58, %v1017_v57 }
  0x36   : > { %v395_v47 = vrot.slane %v381_v60, %v387_v43  ;;  %v348_v0 = vmul.f32 %v861_v46, %v1020_v59  ;;  %v397_v1 = vcombine.low %v345_v56, %v346_v62 }
  0x38   : > { %v396_v48 = vcombine.low %v388_v61, %v395_v47  ;;  %v398_v2 = vcombine.low %v347_v63, %v348_v0  ;;  %v405_v3 = vrot.slane %v397_v1, %v387_v43 }
  0x3a   : > { %762 = vmatprep.mubr.f32.mxu0 %v396_v48  ;;  %v412_v50 = vrot.slane %v398_v2, %v387_v43 }
  0x3c   : > { %v413_v4 = vcombine.low %v405_v3, %v412_v50 }
  0x3e   : > { %763 = vmatmul.mubr.f32.vlgmr.msra.gmra.mrb[0].mxu0 %v413_v4 }
  0x8f   : > { %v822_v52 = vpop.permute.xlu1 %821 }
  0x90   : > { %v811_v5 = vpop.permute.xlu0 %810  ;;  %v823_v7 = vunpack.i.l.bf16 %v822_v52  ;;  %v824_v11 = vunpack.i.h.bf16 %v822_v52 }
  0x91   : > { %v812_v9 = vunpack.i.l.bf16 %v811_v5  ;;  %v813_v18 = vunpack.i.h.bf16 %v811_v5 }
  0x93   : > { %v827_v57 = vpop.permute.xlu1 %826 }
  0x94   : > { %v828_v14 = vunpack.i.l.bf16 %v827_v57  ;;  %v829_v28 = vunpack.i.h.bf16 %v827_v57 }
  0x99   : > { %v816_v15 = vpop.permute.xlu0 %815 }
  0x9a   : > { %v817_v24 = vunpack.i.l.bf16 %v816_v15  ;;  %v818_v31 = vunpack.i.h.bf16 %v816_v15 }
 0x111   : > { %v764_v6 = vpop.f32.mrb[0].mxu0 }
 0x112   : > { %v488_v8 = vadd.f32 %v764_v6, %v700_v53  ;;  %v482_v59 = vpop.f32.mrb[1].mxu0 }
 0x113   : > { %v483_v10 = vadd.f32 %v700_v53, %v482_v59 }
 0x114   : > { %v510_v12 = vcombine.high %v488_v8, %v488_v8  ;;  %v517_v13 = vrot.slane %v488_v8, %v387_v43 }
 0x115   : > { %v493_v16 = vcombine.high %v483_v10, %v483_v10  ;;  %v500_v17 = vrot.slane %v483_v10, %v387_v43 }
 0x116   : > { %v525_v19 = vcombine.high %v517_v13, %v517_v13  ;;  %v613_v20 = vmul.f32 %v823_v7, %v517_v13  ;;  %v524_v21 = vrot.slane %v510_v12, %v387_v43 }
 0x117   : > { %v508_v22 = vcombine.high %v500_v17, %v500_v17  ;;  %v609_v23 = vmul.f32 %v812_v9, %v500_v17  ;;  %v507_v26 = vrot.slane %v493_v16, %v387_v43 }
 0x118   : > { %v614_v27 = vmul.f32 %v824_v11, %v525_v19  ;;  %621 = vst [vmem:[%s253_s26 + $0x8] sm:$0x3] %v613_v20  ;;  %v526_v29 = vcombine.high %v524_v21, %v524_v21  ;;  %v615_v25 = vmul.f32 %v828_v14, %v524_v21 }
 0x119   : > { %v610_v30 = vmul.f32 %v813_v18, %v508_v22  ;;  %617 = vst [vmem:[%s253_s26] sm:$0x3] %v609_v23  ;;  %v509_v32 = vcombine.high %v507_v26, %v507_v26  ;;  %v611_v33 = vmul.f32 %v817_v24, %v507_v26 }
 0x11a   : > { %622 = vst [vmem:[%s253_s26 + $0xa] sm:$0x3] %v614_v27  ;;  %v616_v34 = vmul.f32 %v829_v28, %v526_v29  ;;  %623 = vst [vmem:[%s253_s26 + $0xc] sm:$0x3] %v615_v25 }
 0x11b   : > { %618 = vst [vmem:[%s253_s26 + $0x2] sm:$0x3] %v610_v30  ;;  %v612_v35 = vmul.f32 %v818_v31, %v509_v32  ;;  %619 = vst [vmem:[%s253_s26 + $0x4] sm:$0x3] %v611_v33 }
 0x11c   : > { %624 = vst [vmem:[%s253_s26 + $0xe] sm:$0x3] %v616_v34 }
 0x11d   : > { %620 = vst [vmem:[%s253_s26 + $0x6] sm:$0x3] %v612_v35 }
 0x11e PF: > { %s16_s21 = sadd.s32 1, %s868_s21  }
 0x11f   : > { %p13_p4 = scmp.ge.s32.totalorder %s16_s21, 5  }
 0x121   :  { %15 = sbr.rel (!%p13_p4) target bundleno = 1 (0x1), region = 74 }

// kernel: downsample_conv_module.2
= control target key start
LH: loop header
LB: loop body
LE: loop exit
PB: predicated region body
PF: predicated region fallthrough
CT: control target
= control target key end

     0   :  { %s1617_s18 = smov 0   ;;  %s2213_s0 = inlined_call_operand.vmem [shape: f32[38,2,128], index: 0, kind: input, shape index: {}]   ;;  %s2214_s1 = inlined_call_operand.vmem [shape: f32[128,128], index: 1, kind: input, shape index: {}]   ;;  %s2215_s2 = inlined_call_operand.vmem [shape: f32[15,128], index: 2, kind: input, shape index: {}]   ;;  %s2216_s3 = inlined_call_operand.vmem [shape: f32[1,128], index: 3, kind: input, shape index: {}]   ;;  %s2217_s4 = inlined_call_operand.vmem [shape: f32[24,2,128], index: 4, kind: output, shape index: {0}]   ;;  %s2218_s5 = inlined_call_operand.vmem [shape: f32[1,8,128], index: 5, kind: output, shape index: {1}]  }
   0x1 LB: > { %s1623_s19 = sadd.s32 4294967295, %s1582_s18   ;;  %p1395_p0 = scmp.ge.s32.totalorder %s1582_s18, 1  ;;  %s1582_s18 = sphi %s1617_s18, %s16_s18  }
   0x2   : > { %p151_p1 = scmp.lt.s32.totalorder %s1582_s18, 4 }
   0x4   : > { %p152_p2 = pnand %p1395_p0, %p151_p1 }
   0x6   : > { %155 = sbr.rel (%p152_p2) target bundleno = 404 (0x194), region = 32 }
   0xd   : > { %s1628_s20 = sshll.u32 %s1623_s19, 3  ;;  %s179_s21 = ssub.s32 0, %s1623_s19 }
   0xe   : > { %p173_p3 = scmp.lt.s32.totalorder %s1628_s20, 23  ;;  %p178_p4 = scmp.lt.s32.totalorder %s1623_s19, 0 }
   0xf   : > { %s1398_s22 = smin.u32 %s1623_s19, %s179_s21  ;;  %p1399_p5 = scmp.ne.s32.totalorder %s1623_s19, 0 }
  0x10   : > { %s174_s23 = scalar_select %p173_p3, %s1628_s20, 23 }
  0x11   : > { %s181_s24 = sand.u32 1, %s1398_s22   ;;  %187 = sbr.rel (%p1399_p5) target bundleno = 26 (0x1a), region = 36  ;;  %v227_v0 = vld [vmem:[%s2213_s0] sm:$0xff] (!%p1399_p5)  ;;  %v229_v1 = vld [vmem:[%s2213_s0 + $0x8] sm:$0xff] (!%p1399_p5)  ;;  %v231_v2 = vld [vmem:[%s2213_s0 + $0x10] sm:$0xff] (!%p1399_p5) }
  0x12   : > { %s1397_s25 = sshll.u32 %s174_s23, 1  ;;  %s182_s26 = ssub.s32 0, %s181_s24  ;;  %228 = vst [vmem:[#allocation2] sm:$0xff] (!%p1399_p5), %v227_v0  ;;  %230 = vst [vmem:[#allocation2 + $0x8] sm:$0xff] (!%p1399_p5), %v229_v1  ;;  %v233_v3 = vld [vmem:[%s2213_s0 + $0x18] sm:$0xff] (!%p1399_p5)  ;;  %v235_v4 = vld [vmem:[%s2213_s0 + $0x20] sm:$0xff] (!%p1399_p5) }
  0x13   : > { %s1638_s29 = scalar_lea.vmem %s2217_s4, %s1397_s25  ;;  %s2267_s26 = smov (!%p178_p4, %s182_s26), %s181_s24  ;;  %232 = vst [vmem:[#allocation2 + $0x10] sm:$0xff] (!%p1399_p5), %v231_v2  ;;  %v1400_v5 = vld [vmem:[%s2213_s0 + $0x28] sm:$0xf] (!%p1399_p5)  ;;  %234 = vst [vmem:[#allocation2 + $0x18] sm:$0xff] (!%p1399_p5), %v233_v3 }
  0x14   : > { %236 = vst [vmem:[#allocation2 + $0x20] sm:$0xff] (!%p1399_p5), %v235_v4  ;;  %247 = vst [vmem:[#allocation2 + $0x28] sm:$0xf] (!%p1399_p5), %v1400_v5 }
  0x18   : > { %251 = vsyncadd [#allocation4], 704  ;;  %v1584_v6 = vmov 0.0  }
  0x19   : > { %252 = vst [vmem:[%s2218_s5] sm:$0xff] %v1584_v6 }
  0x1a PF: > { %s253_s22 = sadd.s32 1, %s1623_s19 }
  0x1b   : > { %p1401_p6 = scmp.ge.s32.totalorder %s253_s22, 3 }
  0x1c   : > { %s258_s23 = ssub.s32 (!%p1401_p6), 1, %s2267_s26  ;;  %s1402_s24 = sshll.u32 (!%p1401_p6), %s1623_s19, 4 }
  0x1d   : > { %257 = sbr.rel (%p1401_p6) target bundleno = 37 (0x25), region = 77  ;;  %s1339_s28 = scalar_lea.vmem (!%p1401_p6), %s2213_s0, %s1402_s24 }
  0x1e   : > { %s262_s30 = smul.u32 (!%p1401_p6), 44, %s258_s23  ;;  %v1404_v7 = vld [vmem:[%s1339_s28 + $0x10] sm:$0xff] (!%p1401_p6)  ;;  %v1405_v8 = vld [vmem:[%s1339_s28 + $0x18] sm:$0xff] (!%p1401_p6)  ;;  %v1406_v9 = vld [vmem:[%s1339_s28 + $0x20] sm:$0xff] (!%p1401_p6)  ;;  %s264_s7 = scalar_lea.sflag (!%p1401_p6), [#allocation4], %s258_s23 }
  0x1f   : > { %v1407_v10 = vld [vmem:[%s1339_s28 + $0x28] sm:$0xff] (!%p1401_p6)  ;;  %v1408_v11 = vld [vmem:[%s1339_s28 + $0x30] sm:$0xff] (!%p1401_p6)  ;;  %v1409_v12 = vld [vmem:[%s1339_s28 + $0x38] sm:$0xf] (!%p1401_p6) }
  0x20   : > { %s263_s6 = scalar_lea.vmem (!%p1401_p6), [#allocation2], %s262_s30 }
  0x21   : > { %303 = vst [vmem:[%s263_s6] sm:$0xff] (!%p1401_p6), %v1404_v7  ;;  %305 = vst [vmem:[%s263_s6 + $0x8] sm:$0xff] (!%p1401_p6), %v1405_v8 }
  0x22   : > { %307 = vst [vmem:[%s263_s6 + $0x10] sm:$0xff] (!%p1401_p6), %v1406_v9  ;;  %309 = vst [vmem:[%s263_s6 + $0x18] sm:$0xff] (!%p1401_p6), %v1407_v10 }
  0x23   : > { %311 = vst [vmem:[%s263_s6 + $0x20] sm:$0xff] (!%p1401_p6), %v1408_v11  ;;  %1410 = vst [vmem:[%s263_s6 + $0x28] sm:$0xf] (!%p1401_p6), %v1409_v12 }
  0x24   : > { %326 = vsyncadd %s264_s7, 704 }
  0x25 PF: > { %s328_s19 = smul.u32 44, %s2267_s26  ;;  %s330_s9 = scalar_lea.sflag [#allocation4], %s2267_s26 }
  0x27   : > { %s1671_s8 = scalar_lea.vmem [#allocation2], %s328_s19 }
  0x28   : > { %1578 = dma.done.wait %s330_s9, 704 }
  0x29   : > { %1579 = vsyncadd %s330_s9, 4294966592  ;;  %v1585_v13 = vmov 1983009808   ;;  %v400_v15 = vlaneseq  ;;  %v357_v16 = vld [vmem:[%s2214_s1] sm:$0xff]  ;;  %v358_v17 = vld [vmem:[%s2214_s1 + $0x8] sm:$0xff]  ;;  %s1196_s23 = ssub.s32 18, %s1628_s20 }
  0x2a   : > { %v398_v14 = vunpack.c.l.s4 %v1585_v13  ;;  %v359_v18 = vld [vmem:[%s2214_s1 + $0x10] sm:$0xff]  ;;  %v1515_v21 = vpack.c.bf16 %v358_v17, %v357_v16  ;;  %v360_v22 = vld [vmem:[%s2214_s1 + $0x18] sm:$0xff]  ;;  %v361_v24 = vld [vmem:[%s2214_s1 + $0x20] sm:$0xff]  ;;  %vm1230_vm6 = vcmask 1041408  }
  0x2b   : > { %v1683_v20 = vshrl.u32 %v400_v15, 7  ;;  %v1519_v23 = vpack.c.bf16 %v360_v22, %v359_v18  ;;  %v362_v25 = vld [vmem:[%s2214_s1 + $0x28] sm:$0xff]  ;;  %v363_v28 = vld [vmem:[%s2214_s1 + $0x30] sm:$0xff]  ;;  %v364_v31 = vld [vmem:[%s2214_s1 + $0x38] sm:$0xff] }
  0x2c   : > { %v399_v19 = vunpack.c.0.s8 %v398_v14  ;;  %1516 = vmatprep.subr.bf16.mxu0 %v1515_v21  ;;  %1547 = vmatprep.subr.bf16.mxu1 %v1515_v21  ;;  %v1523_v27 = vpack.c.bf16 %v362_v25, %v361_v24  ;;  %v335_v29 = vld [vmem:[%s1671_s8] sm:$0x3]  ;;  %v336_v30 = vld [vmem:[%s1671_s8 + $0x2] sm:$0x3]  ;;  %v337_v32 = vld [vmem:[%s1671_s8 + $0x4] sm:$0x3]  ;;  %v1527_v40 = vpack.c.bf16 %v364_v31, %v363_v28 }
  0x2d   : > { %2227 = vst [vmem:[#allocation8_spill] sm:$0xff] %v1683_v20  ;;  %1518 = vmatpush3.bf16.msra.mxu0 %v1515_v21  ;;  %1555 = vmatpush3.bf16.msra.mxu1 %v1515_v21  ;;  %v338_v33 = vld [vmem:[%s1671_s8 + $0x6] sm:$0x3]  ;;  %v395_v34 = vcombine.low %v335_v29, %v336_v30  ;;  %v343_v37 = vld [vmem:[%s1671_s8 + $0x10] sm:$0x3]  ;;  %v366_v45 = vld [vmem:[%s2214_s1 + $0x48] sm:$0xff]  ;;  %v1761_v30 = vstv %s1196_s23 }
  0x2e   : > { %v1695_v26 = vsub.s32 %v399_v19, %v1683_v20  ;;  %1520 = vmatprep.subr.bf16.mxu0 %v1519_v23  ;;  %1548 = vmatprep.subr.bf16.mxu1 %v1519_v23  ;;  %v396_v35 = vcombine.low %v337_v32, %v338_v33  ;;  %v344_v38 = vld [vmem:[%s1671_s8 + $0x12] sm:$0x3]  ;;  %v345_v39 = vld [vmem:[%s1671_s8 + $0x14] sm:$0x3]  ;;  %v346_v42 = vld [vmem:[%s1671_s8 + $0x16] sm:$0x3] }
  0x2f   : > { %v429_v43 = vcombine.low %v343_v37, %v344_v38  ;;  %v365_v44 = vld [vmem:[%s2214_s1 + $0x40] sm:$0xff]  ;;  %v430_v46 = vcombine.low %v345_v39, %v346_v42  ;;  %v367_v51 = vld [vmem:[%s2214_s1 + $0x50] sm:$0xff]  ;;  %v368_v52 = vld [vmem:[%s2214_s1 + $0x58] sm:$0xff]  ;;  %2228 = vst [vmem:[#allocation9_spill] sm:$0xff] %v1761_v30  ;;  %vm1198_vm0 = vcmp.gt.s32.totalorder %v1761_v30, 0  ;;  %vm1199_vm1 = vcmp.gt.s32.totalorder %v1761_v30, 1 }
  0x30   : > { %v403_v36 = vrot.slane %v395_v34, %v1695_v26  ;;  %v410_v41 = vrot.slane %v396_v35, %v1695_v26  ;;  %v1531_v50 = vpack.c.bf16 %v366_v45, %v365_v44  ;;  %v1535_v54 = vpack.c.bf16 %v368_v52, %v367_v51  ;;  %v369_v55 = vld [vmem:[%s2214_s1 + $0x60] sm:$0xff]  ;;  %v370_v56 = vld [vmem:[%s2214_s1 + $0x68] sm:$0xff]  ;;  %v371_v6 = vld [vmem:[%s2214_s1 + $0x70] sm:$0xff] }
  0x31   : > { %1522 = vmatpush3.bf16.msra.mxu0 %v1519_v23  ;;  %1556 = vmatpush3.bf16.msra.mxu1 %v1519_v23  ;;  %v437_v48 = vrot.slane %v429_v43, %v1695_v26  ;;  %v444_v49 = vrot.slane %v430_v46, %v1695_v26  ;;  %v339_v57 = vld [vmem:[%s1671_s8 + $0x8] sm:$0x3]  ;;  %v340_v58 = vld [vmem:[%s1671_s8 + $0xa] sm:$0x3]  ;;  %v341_v59 = vld [vmem:[%s1671_s8 + $0xc] sm:$0x3]  ;;  %v1539_v2 = vpack.c.bf16 %v370_v56, %v369_v55 }
  0x32   : > { %1524 = vmatprep.subr.bf16.mxu0 %v1523_v27  ;;  %1549 = vmatprep.subr.bf16.mxu1 %v1523_v27  ;;  %v411_v47 = vcombine.low %v403_v36, %v410_v41  ;;  %v342_v60 = vld [vmem:[%s1671_s8 + $0xe] sm:$0x3]  ;;  %v347_v61 = vld [vmem:[%s1671_s8 + $0x18] sm:$0x3]  ;;  %v348_v62 = vld [vmem:[%s1671_s8 + $0x1a] sm:$0x3]  ;;  %v412_v8 = vcombine.low %v339_v57, %v340_v58 }
  0x33   : > { %v445_v53 = vcombine.low %v437_v48, %v444_v49  ;;  %v349_v63 = vld [vmem:[%s1671_s8 + $0x1c] sm:$0x3]  ;;  %v350_v0 = vld [vmem:[%s1671_s8 + $0x1e] sm:$0x3]  ;;  %v351_v1 = vld [vmem:[%s1671_s8 + $0x20] sm:$0x3]  ;;  %v413_v9 = vcombine.low %v341_v59, %v342_v60  ;;  %v446_v10 = vcombine.low %v347_v61, %v348_v62 }
  0x34   : > { %1506 = vmatprep.mubr.f32.mxu0 %v411_v47  ;;  %v352_v3 = vld [vmem:[%s1671_s8 + $0x22] sm:$0x3]  ;;  %v353_v4 = vld [vmem:[%s1671_s8 + $0x24] sm:$0x3]  ;;  %v354_v5 = vld [vmem:[%s1671_s8 + $0x26] sm:$0x3]  ;;  %v447_v11 = vcombine.low %v349_v63, %v350_v0  ;;  %v420_v15 = vrot.slane %v412_v8, %v1695_v26 }
  0x35   : > { %1526 = vmatpush3.bf16.msra.mxu0 %v1523_v27  ;;  %1557 = vmatpush3.bf16.msra.mxu1 %v1523_v27  ;;  %v372_v7 = vld [vmem:[%s2214_s1 + $0x78] sm:$0xff]  ;;  %v463_v12 = vcombine.low %v351_v1, %v352_v3  ;;  %v464_v13 = vcombine.low %v353_v4, %v354_v5  ;;  %v427_v16 = vrot.slane %v413_v9, %v1695_v26  ;;  %v355_v22 = vld [vmem:[%s1671_s8 + $0x28] sm:$0x3]  ;;  %v356_v23 = vld [vmem:[%s1671_s8 + $0x2a] sm:$0x3]  ;;  %vm1200_vm2 = vcmp.gt.s32.totalorder %v1761_v30, 2 }
  0x36   : > { %1528 = vmatprep.subr.bf16.mxu0 %v1527_v40  ;;  %1550 = vmatprep.subr.bf16.mxu1 %v1527_v40  ;;  %v1543_v14 = vpack.c.bf16 %v372_v7, %v371_v6  ;;  %v454_v17 = vrot.slane %v446_v10, %v1695_v26  ;;  %v461_v18 = vrot.slane %v447_v11, %v1695_v26  ;;  %vm1201_vm3 = vcmp.gt.s32.totalorder %v1761_v30, 3  ;;  %v1794_v60 = vld [vmem:[%s2216_s3] ss:$0 sm:$0xff]  ;;  %v1799_v61 = vld [vmem:[%s2215_s2 + $0x2] ss:$0 sm:$0xff] }
  0x37   : > { %1509 = vmatprep.mubr.f32.mxu1 %v445_v53  ;;  %v471_v19 = vrot.slane %v463_v12, %v1695_v26  ;;  %v478_v21 = vrot.slane %v464_v13, %v1695_v26  ;;  %v428_v24 = vcombine.low %v420_v15, %v427_v16  ;;  %v480_v27 = vcombine.low %v355_v22, %v356_v23  ;;  %v1778_v53 = vld [vmem:[%s2215_s2] ss:$0 sm:$0xff]  ;;  %v1804_v62 = vld [vmem:[%s2215_s2 + $0x3] ss:$0 sm:$0xff]  ;;  %v1809_v63 = vld [vmem:[%s2215_s2 + $0x4] ss:$0 sm:$0xff] }
  0x38   : > { %v462_v25 = vcombine.low %v454_v17, %v461_v18  ;;  %v2219_v58 = vmov 0.0   ;;  %v1815_v4 = vld [vmem:[%s2215_s2 + $0x5] ss:$0 sm:$0xff] }
  0x39   : > { %1530 = vmatpush3.bf16.msra.mxu0 %v1527_v40  ;;  %1558 = vmatpush3.bf16.msra.mxu1 %v1527_v40  ;;  %v479_v28 = vcombine.low %v471_v19, %v478_v21  ;;  %v487_v29 = vrot.slane %v480_v27, %v1695_v26  ;;  %v1789_v59 = vsel %vm1198_vm0, 1.0, %v2219_v58  ;;  %v1820_v6 = vsel %vm1199_vm1, 1.0, %v2219_v58 }
  0x3a   : > { %1532 = vmatprep.subr.bf16.mxu0 %v1531_v50  ;;  %1551 = vmatprep.subr.bf16.mxu1 %v1531_v50  ;;  %2229 = vst [vmem:[#allocation10_spill] sm:$0xff] %v1789_v59  ;;  %2230 = vst [vmem:[#allocation11_spill] sm:$0xff] %v1820_v6  ;;  %v1825_v7 = vsel %vm1200_vm2, 1.0, %v2219_v58  ;;  %v1830_v8 = vsel %vm1201_vm3, 1.0, %v2219_v58 }
  0x3b   : > { %2231 = vst [vmem:[#allocation12_spill] sm:$0xff] %v1825_v7  ;;  %2232 = vst [vmem:[#allocation13_spill] sm:$0xff] %v1830_v8 }
  0x3d   : > { %1534 = vmatpush3.bf16.msra.mxu0 %v1531_v50  ;;  %1559 = vmatpush3.bf16.msra.mxu1 %v1531_v50 }
  0x3e   : > { %1536 = vmatprep.subr.bf16.mxu0 %v1535_v54  ;;  %1552 = vmatprep.subr.bf16.mxu1 %v1535_v54 }
  0x41   : > { %1538 = vmatpush3.bf16.msra.mxu0 %v1535_v54  ;;  %1560 = vmatpush3.bf16.msra.mxu1 %v1535_v54  ;;  %v1783_v54 = vld [vmem:[%s2215_s2 + $0x1] ss:$0 sm:$0xff] }
  0x42   : > { %1540 = vmatprep.subr.bf16.mxu0 %v1539_v2  ;;  %1553 = vmatprep.subr.bf16.mxu1 %v1539_v2 }
  0x45   : > { %1542 = vmatpush3.bf16.msra.mxu0 %v1539_v2  ;;  %1561 = vmatpush3.bf16.msra.mxu1 %v1539_v2 }
  0x46   : > { %1544 = vmatprep.subr.bf16.mxu0 %v1543_v14  ;;  %1554 = vmatprep.subr.bf16.mxu1 %v1543_v14 }
  0x49   : > { %1546 = vmatpush3.bf16.msra.mxu0 %v1543_v14  ;;  %1562 = vmatpush3.bf16.msra.mxu1 %v1543_v14 }
  0x4c   : > { %1507 = vmatmul.mubr.f32.vlgmr.msra.gmra.mrb[0].mxu0 %v428_v24  ;;  %1510 = vmatmul.mubr.f32.vlgmr.msra.gmra.mrb[0].mxu1 %v462_v25 }
  0x4d   : > { %1512 = vmatprep.mubr.f32.mxu1 %v479_v28 }
  0x50   : > { %1513 = vmatmul.mubr.f32.gmra.mrb[2].mxu1 %v487_v29 }
 0x11f   : > { %v1508_v31 = vpop.f32.mrb[0].mxu0  ;;  %v1511_v32 = vpop.f32.mrb[0].mxu1 }
 0x120   : > { %v612_v33 = vcombine.high %v1508_v31, %v1508_v31  ;;  %v619_v34 = vrot.slane %v1508_v31, %v1695_v26  ;;  %1415 = vst.sshfl [vmem:[#allocation3 + $0x8] sm:$0x3 pattern:$0x76325410] %v1508_v31  ;;  %v560_v35 = vpop.f32.mrb[1].mxu0  ;;  %v646_v36 = vcombine.high %v1511_v32, %v1511_v32  ;;  %v653_v37 = vrot.slane %v1511_v32, %v1695_v26  ;;  %v570_v38 = vpop.f32.mrb[1].mxu1 }
 0x121   : > { %1419 = vst.sshfl [vmem:[#allocation3 + $0x18] sm:$0x3 pattern:$0x76325410] %v1511_v32  ;;  %v595_v39 = vcombine.high %v560_v35, %v560_v35  ;;  %v602_v40 = vrot.slane %v560_v35, %v1695_v26  ;;  %v629_v41 = vcombine.high %v570_v38, %v570_v38  ;;  %v636_v42 = vrot.slane %v570_v38, %v1695_v26 }
 0x122   : > { %1413 = vst.sshfl [vmem:[#allocation3] sm:$0x3 pattern:$0x76325410] %v560_v35  ;;  %v626_v43 = vrot.slane %v612_v33, %v1695_v26  ;;  %v627_v44 = vcombine.high %v619_v34, %v619_v34  ;;  %v660_v45 = vrot.slane %v646_v36, %v1695_v26  ;;  %v661_v46 = vcombine.high %v653_v37, %v653_v37 }
 0x123   : > { %1417 = vst.sshfl [vmem:[#allocation3 + $0x10] sm:$0x3 pattern:$0x76325410] %v570_v38  ;;  %v609_v47 = vrot.slane %v595_v39, %v1695_v26  ;;  %v610_v48 = vcombine.high %v602_v40, %v602_v40  ;;  %v643_v49 = vrot.slane %v629_v41, %v1695_v26  ;;  %v644_v50 = vcombine.high %v636_v42, %v636_v42  ;;  %v1514_v51 = vpop.f32.mrb[2].mxu1 }
 0x124   : > { %1416 = vst.sshfl [vmem:[#allocation3 + $0xc] sm:$0x3 pattern:$0x76325410] %v612_v33  ;;  %v628_v52 = vcombine.high %v626_v43, %v626_v43  ;;  %715 = vst [vmem:[#allocation3 + $0xa] sm:$0x3] %v627_v44  ;;  %v662_v55 = vcombine.high %v660_v45, %v660_v45  ;;  %v686_v56 = vrot.slane %v1514_v51, %v1695_v26 }
 0x125   : > { %1420 = vst.sshfl [vmem:[#allocation3 + $0x1c] sm:$0x3 pattern:$0x76325410] %v646_v36  ;;  %723 = vst [vmem:[#allocation3 + $0x1a] sm:$0x3] %v661_v46  ;;  %v611_v0 = vcombine.high %v609_v47, %v609_v47  ;;  %v645_v1 = vcombine.high %v643_v49, %v643_v49 }
 0x126   : > { %1414 = vst.sshfl [vmem:[#allocation3 + $0x4] sm:$0x3 pattern:$0x76325410] %v595_v39  ;;  %v580_v57 = vpop.f32.mrb[3].mxu1  ;;  %v687_v5 = vcombine.high %v686_v56, %v686_v56 }
 0x127   : > { %1418 = vst.sshfl [vmem:[#allocation3 + $0x14] sm:$0x3 pattern:$0x76325410] %v629_v41  ;;  %711 = vst [vmem:[#allocation3 + $0x2] sm:$0x3] %v610_v48  ;;  %v663_v2 = vcombine.high %v580_v57, %v580_v57  ;;  %v670_v3 = vrot.slane %v580_v57, %v1695_v26 }
 0x128   : > { %1423 = vst.sshfl [vmem:[#allocation3 + $0x28] sm:$0x3 pattern:$0x76325410] %v1514_v51  ;;  %719 = vst [vmem:[#allocation3 + $0x12] sm:$0x3] %v644_v50 }
 0x129   : > { %1421 = vst.sshfl [vmem:[#allocation3 + $0x20] sm:$0x3 pattern:$0x76325410] %v580_v57  ;;  %717 = vst [vmem:[#allocation3 + $0xe] sm:$0x3] %v628_v52  ;;  %v677_v12 = vrot.slane %v663_v2, %v1695_v26  ;;  %v678_v13 = vcombine.high %v670_v3, %v670_v3 }
 0x12a   : > { %725 = vst [vmem:[#allocation3 + $0x1e] sm:$0x3] %v662_v55  ;;  %v743_v9 = vld [vmem:[#allocation3 + $0x8] sm:$0x3]  ;;  %713 = vst [vmem:[#allocation3 + $0x6] sm:$0x3] %v611_v0 }
 0x12b   : > { %v772_v10 = vld [vmem:[#allocation3 + $0x8] sm:$0x3]  ;;  %721 = vst [vmem:[#allocation3 + $0x16] sm:$0x3] %v645_v1  ;;  %v756_v14 = vmul.f32 %v1778_v53, %v743_v9  ;;  %v739_v18 = vld [vmem:[#allocation3] sm:$0x3]  ;;  %v679_v25 = vcombine.high %v677_v12, %v677_v12 }
 0x12c   : > { %v801_v11 = vld [vmem:[#allocation3 + $0x8] sm:$0x3]  ;;  %1422 = vst.sshfl [vmem:[#allocation3 + $0x24] sm:$0x3 pattern:$0x76325410] %v663_v2  ;;  %v1835_v15 = vmul.f32 %v1783_v54, %v772_v10  ;;  %v752_v26 = vmul.f32 %v1778_v53, %v739_v18 }
 0x12d   : > { %v830_v16 = vld [vmem:[#allocation3 + $0x8] sm:$0x3]  ;;  %731 = vst [vmem:[#allocation3 + $0x2a] sm:$0x3] %v687_v5  ;;  %v745_v19 = vld [vmem:[#allocation3 + $0xc] sm:$0x3]  ;;  %v1838_v23 = vmul.f32 %v1799_v61, %v801_v11  ;;  %v764_v28 = vadd.f32 %v1794_v60, %v756_v14 }
 0x12e   : > { %v859_v17 = vld [vmem:[#allocation3 + $0x8] sm:$0x3]  ;;  %v774_v21 = vld [vmem:[#allocation3 + $0xc] sm:$0x3]  ;;  %v1841_v24 = vmul.f32 %v1804_v62, %v830_v16  ;;  %727 = vst [vmem:[#allocation3 + $0x22] sm:$0x3] %v678_v13  ;;  %v758_v27 = vmul.f32 %v1778_v53, %v745_v19  ;;  %v760_v50 = vadd.f32 %v1794_v60, %v752_v26 }
 0x12f   : > { %v803_v22 = vld [vmem:[#allocation3 + $0xc] sm:$0x3]  ;;  %v787_v29 = vmul.f32 %v1783_v54, %v774_v21  ;;  %v1848_v33 = vmul.f32 %v1809_v63, %v859_v17  ;;  %v744_v35 = vld [vmem:[#allocation3 + $0xa] sm:$0x3]  ;;  %v1863_v42 = vld [vmem:[%s2215_s2 + $0x6] ss:$0 sm:$0xff] }
 0x130   : > { %v832_v31 = vld [vmem:[#allocation3 + $0xc] sm:$0x3]  ;;  %v773_v36 = vld [vmem:[#allocation3 + $0xa] sm:$0x3]  ;;  %v816_v38 = vmul.f32 %v1799_v61, %v803_v22  ;;  %729 = vst [vmem:[#allocation3 + $0x26] sm:$0x3] %v679_v25  ;;  %v757_v43 = vmul.f32 %v1778_v53, %v744_v35  ;;  %v1867_v44 = vadd.f32 %v1794_v60, %v758_v27 }
 0x131   : > { %v861_v32 = vld [vmem:[#allocation3 + $0xc] sm:$0x3]  ;;  %v802_v37 = vld [vmem:[#allocation3 + $0xa] sm:$0x3]  ;;  %v1852_v39 = vmul.f32 %v1804_v62, %v832_v31  ;;  %v786_v45 = vmul.f32 %v1783_v54, %v773_v36  ;;  %v1873_v49 = vld [vmem:[%s2215_s2 + $0x7] ss:$0 sm:$0xff] }
 0x132   : > { %v890_v34 = vld [vmem:[#allocation3 + $0xc] sm:$0x3]  ;;  %v1855_v40 = vmul.f32 %v1809_v63, %v861_v32  ;;  %v831_v46 = vld [vmem:[#allocation3 + $0xa] sm:$0x3]  ;;  %v746_v51 = vld [vmem:[#allocation3 + $0xe] sm:$0x3]  ;;  %v1877_v56 = vmul.f32 %v1799_v61, %v802_v37  ;;  %v765_v3 = vadd.f32 %v1794_v60, %v757_v43 }
 0x133   : > { %v1858_v41 = vmul.f32 %v1815_v4, %v890_v34  ;;  %v860_v47 = vld [vmem:[#allocation3 + $0xa] sm:$0x3]  ;;  %v775_v52 = vld [vmem:[#allocation3 + $0xe] sm:$0x3]  ;;  %v1880_v57 = vmul.f32 %v1804_v62, %v831_v46  ;;  %v759_v2 = vmul.f32 %v1778_v53, %v746_v51  ;;  %v794_v9 = vadd.f32 %v786_v45, %v764_v28  ;;  %v919_v18 = vld [vmem:[#allocation3 + $0xc] sm:$0x3] }
 0x134   : > { %v889_v48 = vld [vmem:[#allocation3 + $0xa] sm:$0x3]  ;;  %v804_v55 = vld [vmem:[#allocation3 + $0xe] sm:$0x3]  ;;  %v1883_v0 = vmul.f32 %v1809_v63, %v860_v47  ;;  %v1891_v5 = vmul.f32 %v1783_v54, %v775_v52  ;;  %v1905_v22 = vadd.f32 %v787_v29, %v765_v3  ;;  %v1910_v25 = vmul.f32 %v1863_v42, %v919_v18  ;;  %v740_v28 = vld [vmem:[#allocation3 + $0x2] sm:$0x3] }
 0x135   : > { %v1886_v1 = vmul.f32 %v1815_v4, %v889_v48  ;;  %v833_v10 = vld [vmem:[#allocation3 + $0xe] sm:$0x3]  ;;  %v1894_v13 = vmul.f32 %v1799_v61, %v804_v55  ;;  %v1907_v26 = vadd.f32 %v816_v38, %v794_v9  ;;  %v741_v31 = vld [vmem:[#allocation3 + $0x4] sm:$0x3]  ;;  %v742_v32 = vld [vmem:[#allocation3 + $0x6] sm:$0x3]  ;;  %v753_v35 = vmul.f32 %v1778_v53, %v740_v28 }
 0x136   : > { %v862_v11 = vld [vmem:[#allocation3 + $0xe] sm:$0x3]  ;;  %v1897_v14 = vmul.f32 %v1804_v62, %v833_v10  ;;  %v754_v36 = vmul.f32 %v1778_v53, %v741_v31  ;;  %v755_v29 = vmul.f32 %v1778_v53, %v742_v32  ;;  %v769_v37 = vld [vmem:[#allocation3 + $0x2] sm:$0x3]  ;;  %v770_v38 = vld [vmem:[#allocation3 + $0x4] sm:$0x3]  ;;  %v1930_v3 = vadd.f32 %v1794_v60, %v759_v2 }
 0x137   : > { %v891_v12 = vld [vmem:[#allocation3 + $0xe] sm:$0x3]  ;;  %v1900_v16 = vmul.f32 %v1809_v63, %v862_v11  ;;  %v771_v43 = vld [vmem:[#allocation3 + $0x6] sm:$0x3]  ;;  %v782_v45 = vmul.f32 %v1783_v54, %v769_v37  ;;  %v783_v46 = vmul.f32 %v1783_v54, %v770_v38  ;;  %v799_v48 = vld [vmem:[#allocation3 + $0x4] sm:$0x3]  ;;  %v761_v53 = vadd.f32 %v1794_v60, %v753_v35 }
 0x138   : > { %v1903_v17 = vmul.f32 %v1815_v4, %v891_v12  ;;  %v920_v19 = vld [vmem:[#allocation3 + $0xe] sm:$0x3]  ;;  %v784_v47 = vmul.f32 %v1783_v54, %v771_v43  ;;  %v800_v51 = vld [vmem:[#allocation3 + $0x6] sm:$0x3]  ;;  %v1927_v55 = vld [vmem:[%s2215_s2 + $0x8] ss:$0 sm:$0xff]  ;;  %v762_v9 = vadd.f32 %v1794_v60, %v754_v36  ;;  %v763_v10 = vadd.f32 %v1794_v60, %v755_v29 }
 0x139   : > { %v949_v21 = vld [vmem:[#allocation3 + $0xe] sm:$0x3]  ;;  %v1913_v27 = vmul.f32 %v1863_v42, %v920_v19  ;;  %v829_v52 = vld [vmem:[#allocation3 + $0x6] sm:$0x3]  ;;  %v812_v11 = vmul.f32 %v1799_v61, %v799_v48  ;;  %v896_v12 = vld [vmem:[#allocation3 + $0x18] sm:$0x3]  ;;  %v790_v28 = vadd.f32 %v782_v45, %v760_v50  ;;  %v813_v2 = vmul.f32 %v1799_v61, %v800_v51 }
 0x13a   : > { %v1916_v34 = vmul.f32 %v1873_v49, %v949_v21  ;;  %v925_v18 = vld [vmem:[#allocation3 + $0x18] sm:$0x3]  ;;  %v926_v19 = vld [vmem:[#allocation3 + $0x1a] sm:$0x3]  ;;  %v1939_v21 = vld [vmem:[%s2215_s2 + $0x9] ss:$0 sm:$0xff]  ;;  %v842_v31 = vmul.f32 %v1804_v62, %v829_v52  ;;  %v1944_v32 = vmul.f32 %v1815_v4, %v896_v12  ;;  %v791_v37 = vadd.f32 %v783_v46, %v761_v53 }
 0x13b   : > { %v954_v35 = vld [vmem:[#allocation3 + $0x18] sm:$0x3]  ;;  %v955_v60 = vld [vmem:[#allocation3 + $0x1a] sm:$0x3]  ;;  %v956_v36 = vld [vmem:[#allocation3 + $0x1c] sm:$0x3]  ;;  %v792_v38 = vadd.f32 %v784_v47, %v762_v9  ;;  %v793_v43 = vadd.f32 %v1835_v15, %v763_v10  ;;  %v1953_v50 = vmul.f32 %v1863_v42, %v925_v18  ;;  %v820_v52 = vadd.f32 %v812_v11, %v790_v28 }
 0x13c   : > { %v1949_v29 = vld [vmem:[%s2215_s2 + $0xa] ss:$0 sm:$0xff]  ;;  %v983_v45 = vld [vmem:[#allocation3 + $0x18] sm:$0x3]  ;;  %v984_v48 = vld [vmem:[#allocation3 + $0x1a] sm:$0x3]  ;;  %v1956_v12 = vmul.f32 %v1863_v42, %v926_v19  ;;  %v1959_v58 = vmul.f32 %v1873_v49, %v954_v35  ;;  %v1962_v20 = vmul.f32 %v1873_v49, %v955_v60  ;;  %v821_v53 = vadd.f32 %v813_v2, %v791_v37 }
 0x13d   : > { %v985_v51 = vld [vmem:[#allocation3 + $0x1c] sm:$0x3]  ;;  %v1012_v46 = vld [vmem:[#allocation3 + $0x18] sm:$0x3]  ;;  %v1013_v47 = vld [vmem:[#allocation3 + $0x1a] sm:$0x3]  ;;  %v822_v9 = vadd.f32 %v1838_v23, %v792_v38  ;;  %v1971_v10 = vmul.f32 %v1873_v49, %v956_v36  ;;  %v1974_v11 = vmul.f32 %v1927_v55, %v983_v45  ;;  %v850_v35 = vadd.f32 %v842_v31, %v820_v52 }
 0x13e   : > { %v1967_v15 = vld [vmem:[%s2215_s2 + $0xb] ss:$0 sm:$0xff]  ;;  %v1014_v18 = vld [vmem:[#allocation3 + $0x1c] sm:$0x3]  ;;  %v1041_v19 = vld [vmem:[#allocation3 + $0x18] sm:$0x3]  ;;  %v1982_v60 = vmul.f32 %v1927_v55, %v984_v48  ;;  %v1985_v2 = vmul.f32 %v1927_v55, %v985_v51  ;;  %v1988_v23 = vmul.f32 %v1939_v21, %v1012_v46  ;;  %v851_v45 = vadd.f32 %v1841_v24, %v821_v53 }
 0x13f   : > { %v1979_v28 = vld [vmem:[%s2215_s2 + $0xc] ss:$0 sm:$0xff]  ;;  %v1042_v36 = vld [vmem:[#allocation3 + $0x1a] sm:$0x3]  ;;  %v1043_v37 = vld [vmem:[#allocation3 + $0x1c] sm:$0x3]  ;;  %v1997_v31 = vmul.f32 %v1939_v21, %v1013_v47  ;;  %v2000_v48 = vmul.f32 %v1939_v21, %v1014_v18  ;;  %v2003_v51 = vmul.f32 %v1949_v29, %v1041_v19  ;;  %v2006_v7 = vadd.f32 %v1848_v33, %v850_v35 }
 0x140   : > { %2233 = vst [vmem:[#allocation14_spill] sm:$0xff] %v1979_v28  ;;  %v1993_v38 = vld [vmem:[%s2215_s2 + $0xd] ss:$0 sm:$0xff]  ;;  %v1070_v52 = vld [vmem:[#allocation3 + $0x18] sm:$0x3]  ;;  %v2009_v6 = vmul.f32 %v1949_v29, %v1042_v36  ;;  %v2012_v24 = vmul.f32 %v1949_v29, %v1043_v37 }
 0x141   : > { %2234 = vst [vmem:[#allocation15_spill] sm:$0xff] %v2000_v48  ;;  %v1071_v46 = vld [vmem:[#allocation3 + $0x1a] sm:$0x3]  ;;  %v1072_v8 = vld [vmem:[#allocation3 + $0x1c] sm:$0x3]  ;;  %v2015_v47 = vmul.f32 %v1967_v15, %v1070_v52 }
 0x142   : > { %2235 = vst [vmem:[#allocation16_spill] sm:$0xff] %v2009_v6  ;;  %2236 = vst [vmem:[#allocation17_spill] sm:$0xff] %v2012_v24  ;;  %v1099_v53 = vld [vmem:[#allocation3 + $0x18] sm:$0x3]  ;;  %v1100_v18 = vld [vmem:[#allocation3 + $0x1a] sm:$0x3]  ;;  %v2023_v59 = vmul.f32 %v1967_v15, %v1071_v46  ;;  %v2026_v33 = vmul.f32 %v1967_v15, %v1072_v8  ;;  %v796_v8 = vadd.f32 %v1891_v5, %v1867_v44 }
 0x143   : > { %v2020_v19 = vld [vmem:[%s2215_s2 + $0xe] ss:$0 sm:$0xff]  ;;  %v1101_v35 = vld [vmem:[#allocation3 + $0x1c] sm:$0x3]  ;;  %v2029_v36 = vmul.f32 %v1979_v28, %v1099_v53  ;;  %v2032_v37 = vmul.f32 %v1979_v28, %v1100_v18  ;;  %v1129_v52 = vld [vmem:[#allocation3 + $0x1a] sm:$0x3] }
 0x144   : > { %2237 = vst [vmem:[#allocation18_spill] sm:$0xff] %v2023_v59  ;;  %2238 = vst [vmem:[#allocation19_spill] sm:$0xff] %v2026_v33  ;;  %v2035_v30 = vmul.f32 %v1979_v28, %v1101_v35  ;;  %v1130_v24 = vld [vmem:[#allocation3 + $0x1c] sm:$0x3]  ;;  %v2038_v6 = vmul.f32 %v1993_v38, %v1129_v52  ;;  %v823_v33 = vadd.f32 %v1877_v56, %v793_v43  ;;  %v1160_v59 = vld [vmem:[#allocation3 + $0x1e] sm:$0x3] }
 0x145   : > { %2239 = vst [vmem:[#allocation20_spill] sm:$0xff] %v2029_v36  ;;  %2240 = vst [vmem:[#allocation21_spill] sm:$0xff] %v2032_v37  ;;  %v1159_v46 = vld [vmem:[#allocation3 + $0x1c] sm:$0x3]  ;;  %v2044_v53 = vmul.f32 %v1993_v38, %v1130_v24  ;;  %v776_v37 = vld [vmem:[#allocation3 + $0x10] sm:$0x3]  ;;  %v852_v52 = vadd.f32 %v1880_v57, %v822_v9  ;;  %v2053_v28 = vmul.f32 %v2020_v19, %v1160_v59 }
 0x146   : > { %2241 = vst [vmem:[#allocation22_spill] sm:$0xff] %v2035_v30  ;;  %2242 = vst [vmem:[#allocation23_spill] sm:$0xff] %v2038_v6  ;;  %v2047_v18 = vmul.f32 %v2020_v19, %v1159_v46  ;;  %v805_v35 = vld [vmem:[#allocation3 + $0x10] sm:$0x3]  ;;  %v825_v30 = vadd.f32 %v1894_v13, %v1905_v22  ;;  %v789_v44 = vmul.f32 %v1783_v54, %v776_v37  ;;  %v806_v56 = vld [vmem:[#allocation3 + $0x12] sm:$0x3] }
 0x147   : > { %2243 = vst [vmem:[#allocation24_spill] sm:$0xff] %v2044_v53  ;;  %2245 = vst [vmem:[#allocation26_spill] sm:$0xff] %v2053_v28  ;;  %v818_v5 = vmul.f32 %v1799_v61, %v805_v35  ;;  %v834_v43 = vld [vmem:[#allocation3 + $0x10] sm:$0x3]  ;;  %v835_v24 = vld [vmem:[#allocation3 + $0x12] sm:$0x3]  ;;  %v853_v46 = vadd.f32 %v1852_v39, %v823_v33  ;;  %v854_v59 = vadd.f32 %v1897_v14, %v1907_v26 }
 0x148   : > { %2244 = vst [vmem:[#allocation25_spill] sm:$0xff] %v2047_v18  ;;  %v819_v18 = vmul.f32 %v1799_v61, %v806_v56  ;;  %v836_v53 = vld [vmem:[#allocation3 + $0x14] sm:$0x3]  ;;  %v847_v6 = vmul.f32 %v1804_v62, %v834_v43  ;;  %v848_v13 = vmul.f32 %v1804_v62, %v835_v24  ;;  %v863_v57 = vld [vmem:[#allocation3 + $0x10] sm:$0x3]  ;;  %v797_v54 = vadd.f32 %v789_v44, %v1930_v3 }
 0x149   : > { %v864_v22 = vld [vmem:[#allocation3 + $0x12] sm:$0x3]  ;;  %v826_v9 = vadd.f32 %v818_v5, %v796_v8  ;;  %v849_v37 = vmul.f32 %v1804_v62, %v836_v53  ;;  %v865_v35 = vld [vmem:[#allocation3 + $0x14] sm:$0x3]  ;;  %v866_v28 = vld [vmem:[#allocation3 + $0x16] sm:$0x3]  ;;  %v876_v39 = vmul.f32 %v1809_v63, %v863_v57  ;;  %v881_v3 = vadd.f32 %v1883_v0, %v851_v45 }
 0x14a   : > { %v892_v61 = vld [vmem:[#allocation3 + $0x10] sm:$0x3]  ;;  %v855_v33 = vadd.f32 %v847_v6, %v825_v30  ;;  %v877_v56 = vmul.f32 %v1809_v63, %v864_v22  ;;  %v878_v43 = vmul.f32 %v1809_v63, %v865_v35  ;;  %v879_v24 = vmul.f32 %v1809_v63, %v866_v28  ;;  %v893_v14 = vld [vmem:[#allocation3 + $0x12] sm:$0x3]  ;;  %v894_v26 = vld [vmem:[#allocation3 + $0x14] sm:$0x3] }
 0x14b   : > { %v827_v36 = vadd.f32 %v819_v18, %v797_v54  ;;  %v856_v48 = vadd.f32 %v848_v13, %v826_v9  ;;  %v882_v62 = vadd.f32 %v1855_v40, %v852_v52  ;;  %v895_v8 = vld [vmem:[#allocation3 + $0x16] sm:$0x3]  ;;  %v883_v53 = vadd.f32 %v1900_v16, %v853_v46  ;;  %v921_v28 = vld [vmem:[#allocation3 + $0x10] sm:$0x3]  ;;  %v922_v18 = vld [vmem:[#allocation3 + $0x12] sm:$0x3] }
 0x14c   : > { %v884_v44 = vadd.f32 %v876_v39, %v854_v59  ;;  %v885_v5 = vadd.f32 %v877_v56, %v855_v33  ;;  %v905_v30 = vmul.f32 %v1815_v4, %v892_v61  ;;  %v906_v22 = vmul.f32 %v1815_v4, %v893_v14  ;;  %v923_v13 = vld [vmem:[#allocation3 + $0x14] sm:$0x3]  ;;  %v924_v52 = vld [vmem:[#allocation3 + $0x16] sm:$0x3]  ;;  %v951_v39 = vld [vmem:[#allocation3 + $0x12] sm:$0x3] }
 0x14d   : > { %v857_v6 = vadd.f32 %v849_v37, %v827_v36  ;;  %v886_v57 = vadd.f32 %v878_v43, %v856_v48  ;;  %v907_v63 = vmul.f32 %v1815_v4, %v894_v26  ;;  %v908_v0 = vmul.f32 %v1815_v4, %v895_v8  ;;  %v950_v4 = vld [vmem:[#allocation3 + $0x10] sm:$0x3]  ;;  %v952_v61 = vld [vmem:[#allocation3 + $0x14] sm:$0x3]  ;;  %v953_v33 = vld [vmem:[#allocation3 + $0x16] sm:$0x3] }
 0x14e   : > { %v910_v40 = vadd.f32 %v1886_v1, %v2006_v7  ;;  %v911_v16 = vadd.f32 %v1858_v41, %v881_v3  ;;  %v912_v45 = vadd.f32 %v1903_v17, %v882_v62  ;;  %v913_v36 = vadd.f32 %v905_v30, %v883_v53  ;;  %v979_v56 = vld [vmem:[#allocation3 + $0x10] sm:$0x3]  ;;  %v980_v43 = vld [vmem:[#allocation3 + $0x12] sm:$0x3] }
 0x14f   : > { %v887_v46 = vadd.f32 %v879_v24, %v857_v6  ;;  %v914_v48 = vadd.f32 %v906_v22, %v884_v44  ;;  %v915_v59 = vadd.f32 %v907_v63, %v885_v5  ;;  %v916_v54 = vadd.f32 %v908_v0, %v886_v57  ;;  %v982_v44 = vld [vmem:[#allocation3 + $0x16] sm:$0x3]  ;;  %v1009_v6 = vld [vmem:[#allocation3 + $0x12] sm:$0x3]  ;;  %v1010_v57 = vld [vmem:[#allocation3 + $0x14] sm:$0x3] }
 0x150   : > { %v934_v9 = vmul.f32 %v1863_v42, %v921_v28  ;;  %v935_v37 = vmul.f32 %v1863_v42, %v922_v18  ;;  %v936_v35 = vmul.f32 %v1863_v42, %v923_v13  ;;  %v937_v41 = vmul.f32 %v1863_v42, %v924_v52  ;;  %v981_v42 = vld [vmem:[#allocation3 + $0x14] sm:$0x3] }
 0x151   : > { %v917_v7 = vadd.f32 %v1944_v32, %v887_v46  ;;  %v940_v1 = vadd.f32 %v1910_v25, %v910_v40  ;;  %v941_v17 = vadd.f32 %v1913_v27, %v911_v16  ;;  %v946_v3 = vadd.f32 %v1953_v50, %v916_v54  ;;  %v1011_v50 = vld [vmem:[#allocation3 + $0x16] sm:$0x3]  ;;  %v1039_v13 = vld [vmem:[#allocation3 + $0x14] sm:$0x3]  ;;  %v1165_v54 = vld [vmem:[#allocation3 + $0x28] sm:$0x3] }
 0x152   : > { %v942_v24 = vadd.f32 %v934_v9, %v912_v45  ;;  %v943_v14 = vadd.f32 %v935_v37, %v913_v36  ;;  %v944_v26 = vadd.f32 %v936_v35, %v914_v48  ;;  %v945_v62 = vadd.f32 %v937_v41, %v915_v59  ;;  %v1069_v45 = vld [vmem:[#allocation3 + $0x16] sm:$0x3]  ;;  %v1136_v59 = vld [vmem:[#allocation3 + $0x28] sm:$0x3] }
 0x153   : > { %v963_v8 = vmul.f32 %v1873_v49, %v950_v4  ;;  %v964_v53 = vmul.f32 %v1873_v49, %v951_v39  ;;  %v965_v32 = vmul.f32 %v1873_v49, %v952_v61  ;;  %v966_v25 = vmul.f32 %v1873_v49, %v953_v33  ;;  %v1166_v4 = vld [vmem:[#allocation3 + $0x2a] sm:$0x3]  ;;  %v986_v39 = vld [vmem:[#allocation3 + $0x1e] sm:$0x3] }
 0x154   : > { %v970_v27 = vadd.f32 %v1916_v34, %v940_v1  ;;  %v992_v5 = vmul.f32 %v1927_v55, %v979_v56  ;;  %v993_v30 = vmul.f32 %v1927_v55, %v980_v43  ;;  %v975_v18 = vadd.f32 %v1959_v58, %v945_v62  ;;  %v1040_v34 = vld [vmem:[#allocation3 + $0x16] sm:$0x3]  ;;  %v1015_v33 = vld [vmem:[#allocation3 + $0x1e] sm:$0x3] }
 0x155   : > { %v971_v22 = vadd.f32 %v963_v8, %v941_v17  ;;  %v972_v63 = vadd.f32 %v964_v53, %v942_v24  ;;  %v973_v28 = vadd.f32 %v965_v32, %v943_v14  ;;  %v974_v0 = vadd.f32 %v966_v25, %v944_v26  ;;  %v1016_v53 = vld [vmem:[#allocation3 + $0x20] sm:$0x3]  ;;  %v1044_v32 = vld [vmem:[#allocation3 + $0x1e] sm:$0x3] }
 0x156   : > { %v994_v40 = vmul.f32 %v1927_v55, %v981_v42  ;;  %v995_v49 = vmul.f32 %v1927_v55, %v982_v44  ;;  %v1000_v16 = vadd.f32 %v992_v5, %v970_v27  ;;  %v1022_v46 = vmul.f32 %v1939_v21, %v1009_v6 }
 0x157   : > { %v1001_v52 = vadd.f32 %v993_v30, %v971_v22  ;;  %v1023_v36 = vmul.f32 %v1939_v21, %v1010_v57  ;;  %v1024_v48 = vmul.f32 %v1939_v21, %v1011_v50  ;;  %v1004_v37 = vadd.f32 %v1974_v11, %v974_v0  ;;  %v1045_v57 = vld [vmem:[#allocation3 + $0x20] sm:$0x3]  ;;  %v1046_v50 = vld [vmem:[#allocation3 + $0x22] sm:$0x3]  ;;  %v2247_v22 = vld [vmem:[#allocation20_spill] sm:$0xff] }
 0x158   : > { %v1002_v9 = vadd.f32 %v994_v40, %v972_v63  ;;  %v1003_v58 = vadd.f32 %v995_v49, %v973_v28  ;;  %v1052_v35 = vmul.f32 %v1949_v29, %v1039_v13  ;;  %v1030_v61 = vadd.f32 %v1022_v46, %v1000_v16  ;;  %v2248_v63 = vld [vmem:[#allocation21_spill] sm:$0xff]  ;;  %v2249_v40 = vld [vmem:[#allocation16_spill] sm:$0xff]  ;;  %v1075_v49 = vld [vmem:[#allocation3 + $0x22] sm:$0x3] }
 0x159   : > { %v1031_v41 = vadd.f32 %v1023_v36, %v1001_v52  ;;  %v1053_v1 = vmul.f32 %v1949_v29, %v1040_v34  ;;  %v1082_v17 = vmul.f32 %v1967_v15, %v1069_v45  ;;  %v2107_v24 = vmul.f32 %v1993_v38, %v1136_v59  ;;  %v2250_v16 = vld [vmem:[#allocation23_spill] sm:$0xff]  ;;  %v2251_v45 = vld [vmem:[#allocation24_spill] sm:$0xff]  ;;  %v2252_v36 = vld [vmem:[#allocation17_spill] sm:$0xff] }
 0x15a   : > { %v1032_v56 = vadd.f32 %v1024_v48, %v1002_v9  ;;  %v1033_v43 = vadd.f32 %v1988_v23, %v1003_v58  ;;  %v2110_v14 = vmul.f32 %v2020_v19, %v1165_v54  ;;  %v1060_v11 = vadd.f32 %v1052_v35, %v1030_v61  ;;  %v1102_v59 = vld [vmem:[#allocation3 + $0x1e] sm:$0x3]  ;;  %v2253_v35 = vld [vmem:[#allocation25_spill] sm:$0xff] }
 0x15b   : > { %v1061_v26 = vadd.f32 %v1053_v1, %v1031_v41  ;;  %v2113_v62 = vmul.f32 %v2020_v19, %v1166_v4  ;;  %v947_v8 = vadd.f32 %v1956_v12, %v917_v7  ;;  %v976_v44 = vadd.f32 %v1962_v20, %v946_v3  ;;  %v2246_v20 = vld [vmem:[#allocation15_spill] sm:$0xff]  ;;  %v1104_v1 = vld [vmem:[#allocation3 + $0x22] sm:$0x3] }
 0x15c   : > { %v1062_v42 = vadd.f32 %v2003_v51, %v1032_v56  ;;  %v999_v23 = vmul.f32 %v1927_v55, %v986_v39  ;;  %v1005_v25 = vadd.f32 %v1982_v60, %v975_v18  ;;  %v1090_v27 = vadd.f32 %v1082_v17, %v1060_v11  ;;  %v1073_v55 = vld [vmem:[#allocation3 + $0x1e] sm:$0x3]  ;;  %v1074_v18 = vld [vmem:[#allocation3 + $0x20] sm:$0x3]  ;;  %v1105_v17 = vld [vmem:[#allocation3 + $0x24] sm:$0x3] }
 0x15d   : > { %v1091_v5 = vadd.f32 %v2015_v47, %v1061_v26  ;;  %v977_v30 = vadd.f32 %v1971_v10, %v947_v8  ;;  %v1028_v6 = vmul.f32 %v1939_v21, %v1015_v33  ;;  %v1006_v12 = vadd.f32 %v1985_v2, %v976_v44  ;;  %v1106_v33 = vld [vmem:[#allocation3 + $0x26] sm:$0x3]  ;;  %v2254_v56 = vld [vmem:[#allocation9_spill] sm:$0xff]  ;;  %v2255_v11 = vld [vmem:[#allocation18_spill] sm:$0xff] }
 0x15e   : > { %v1029_v7 = vmul.f32 %v1939_v21, %v1016_v53  ;;  %v1034_v51 = vadd.f32 %v1997_v31, %v1004_v37  ;;  %v1035_v3 = vadd.f32 %v2246_v20, %v1005_v25  ;;  %v1120_v60 = vadd.f32 %v2247_v22, %v1090_v27  ;;  %v1076_v31 = vld [vmem:[#allocation3 + $0x24] sm:$0x3]  ;;  %v1135_v20 = vld [vmem:[#allocation3 + $0x26] sm:$0x3] }
 0x15f   : > { %v1121_v28 = vadd.f32 %v2248_v63, %v1091_v5  ;;  %v1007_v47 = vadd.f32 %v999_v23, %v977_v30  ;;  %v1057_v10 = vmul.f32 %v1949_v29, %v1044_v32  ;;  %v1036_v13 = vadd.f32 %v1028_v6, %v1006_v12  ;;  %v2256_v8 = vld [vmem:[#allocation19_spill] sm:$0xff]  ;;  %v1132_v23 = vld [vmem:[#allocation3 + $0x20] sm:$0x3]  ;;  %v1133_v6 = vld [vmem:[#allocation3 + $0x22] sm:$0x3] }
 0x160   : > { %v1058_v0 = vmul.f32 %v1949_v29, %v1045_v57  ;;  %v1059_v2 = vmul.f32 %v1949_v29, %v1046_v50  ;;  %v1063_v21 = vadd.f32 %v2249_v40, %v1033_v43  ;;  %v1150_v34 = vadd.f32 %v2250_v16, %v1120_v60  ;;  %v1103_v29 = vld [vmem:[#allocation3 + $0x20] sm:$0x3]  ;;  %v1131_v43 = vld [vmem:[#allocation3 + $0x1e] sm:$0x3] }
 0x161   : > { %v1151_v52 = vadd.f32 %v2251_v45, %v1121_v28  ;;  %v1037_v46 = vadd.f32 %v1029_v7, %v1007_v47  ;;  %v1064_v48 = vadd.f32 %v2252_v36, %v1034_v51  ;;  %v1065_v54 = vadd.f32 %v1057_v10, %v1035_v3  ;;  %v2257_v5 = vld [vmem:[#allocation14_spill] sm:$0xff]  ;;  %v1134_v51 = vld [vmem:[#allocation3 + $0x24] sm:$0x3] }
 0x162   : > { %v1066_v9 = vadd.f32 %v1058_v0, %v1036_v13  ;;  %v1086_v58 = vmul.f32 %v1967_v15, %v1073_v55  ;;  %v1087_v37 = vmul.f32 %v1967_v15, %v1074_v18  ;;  %v1180_v4 = vadd.f32 %v2253_v35, %v1150_v34  ;;  %v2258_v12 = vld [vmem:[#allocation22_spill] sm:$0xff]  ;;  %v1163_v0 = vld [vmem:[#allocation3 + $0x24] sm:$0x3] }
 0x163   : > { %v1067_v39 = vadd.f32 %v1059_v2, %v1037_v46  ;;  %v1088_v61 = vmul.f32 %v1967_v15, %v1075_v49  ;;  %v1089_v41 = vmul.f32 %v1967_v15, %v1076_v31  ;;  %vm1202_vm4 = vcmp.gt.s32.totalorder %v2254_v56, 4  ;;  %v1161_v63 = vld [vmem:[#allocation3 + $0x20] sm:$0x3]  ;;  %v1162_v28 = vld [vmem:[#allocation3 + $0x22] sm:$0x3] }
 0x164   : > { %v1092_v26 = vadd.f32 %v2255_v11, %v1062_v42  ;;  %v1093_v53 = vadd.f32 %v2256_v8, %v1063_v21  ;;  %v1094_v32 = vadd.f32 %v1086_v58, %v1064_v48  ;;  %v1095_v44 = vadd.f32 %v1087_v37, %v1065_v54  ;;  %1188 = vst [vmem:[%s1638_s29] sm:$0x3] %v1180_v4  ;;  %v1164_v2 = vld [vmem:[#allocation3 + $0x26] sm:$0x3] }
 0x165   : > { %v1096_v25 = vadd.f32 %v1088_v61, %v1066_v9  ;;  %v1097_v27 = vadd.f32 %v1089_v41, %v1067_v39  ;;  %v1115_v30 = vmul.f32 %v2257_v5, %v1102_v59  ;;  %v1116_v15 = vmul.f32 %v2257_v5, %v1103_v29  ;;  %v2260_v61 = vld [vmem:[#allocation10_spill] sm:$0xff] }
 0x166   : > { %vm1203_vm5 = vcmp.gt.s32.totalorder %v2254_v56, 5  ;;  %v1117_v57 = vmul.f32 %v2257_v5, %v1104_v1  ;;  %v1118_v42 = vmul.f32 %v2257_v5, %v1105_v17  ;;  %v1119_v50 = vmul.f32 %v2257_v5, %v1106_v33  ;;  %v2262_v1 = vld [vmem:[#allocation11_spill] sm:$0xff]  ;;  %v2263_v33 = vld [vmem:[#allocation12_spill] sm:$0xff] }
 0x167   : > { %v1122_v7 = vadd.f32 %v2258_v12, %v1092_v26  ;;  %v1123_v3 = vadd.f32 %v1115_v30, %v1093_v53  ;;  %v1124_v55 = vadd.f32 %v1116_v15, %v1094_v32  ;;  %v1144_v22 = vmul.f32 %v1993_v38, %v1131_v43 }
 0x168   : > { %v1145_v60 = vmul.f32 %v1993_v38, %v1132_v23  ;;  %v1125_v47 = vadd.f32 %v1117_v57, %v1095_v44  ;;  %v1126_v10 = vadd.f32 %v1118_v42, %v1096_v25  ;;  %v1127_v18 = vadd.f32 %v1119_v50, %v1097_v27 }
 0x169   : > { %v1146_v13 = vmul.f32 %v1993_v38, %v1133_v6  ;;  %v1147_v40 = vmul.f32 %v1993_v38, %v1134_v51  ;;  %v1148_v21 = vmul.f32 %v1993_v38, %v1135_v20  ;;  %v1152_v49 = vadd.f32 %v1144_v22, %v1122_v7  ;;  %v2259_v38 = vld [vmem:[#allocation26_spill] sm:$0xff] }
 0x16a   : > { %v1153_v31 = vadd.f32 %v1145_v60, %v1123_v3  ;;  %v1157_v34 = vadd.f32 %v2107_v24, %v1127_v18  ;;  %v1174_v45 = vmul.f32 %v2020_v19, %v1161_v63  ;;  %v1175_v46 = vmul.f32 %v2020_v19, %v1162_v28 }
 0x16b   : > { %v1154_v16 = vadd.f32 %v1146_v13, %v1124_v55  ;;  %v1155_v36 = vadd.f32 %v1147_v40, %v1125_v47  ;;  %v1156_v48 = vadd.f32 %v1148_v21, %v1126_v10  ;;  %v1176_v59 = vmul.f32 %v2020_v19, %v1163_v0 }
 0x16c   : > { %v1177_v54 = vmul.f32 %v2020_v19, %v1164_v2  ;;  %v1181_v9 = vadd.f32 %v2259_v38, %v1151_v52  ;;  %v1182_v58 = vadd.f32 %v1174_v45, %v1152_v49  ;;  %v1183_v24 = vadd.f32 %v1175_v46, %v1153_v31 }
 0x16d   : > { %v1187_v37 = vadd.f32 %v2113_v62, %v1157_v34  ;;  %v1184_v29 = vadd.f32 %v1176_v59, %v1154_v16  ;;  %v1186_v39 = vadd.f32 %v2110_v14, %v1156_v48  ;;  %v1222_v41 = vmul.f32 %v2260_v61, %v1180_v4  ;;  %v2264_v62 = vld [vmem:[#allocation13_spill] sm:$0xff] }
 0x16e   : > { %v1185_v35 = vadd.f32 %v1177_v54, %v1155_v36  ;;  %1189 = vst [vmem:[%s1638_s29 + $0x2] sm:$0x3] %v1181_v9  ;;  %1190 = vst [vmem:[%s1638_s29 + $0x4] sm:$0x3] %v1182_v58  ;;  %v2261_v19 = vmov 0.0   ;;  %v1223_v17 = vmul.f32 %v2262_v1, %v1181_v9  ;;  %v1224_v43 = vmul.f32 %v2263_v33, %v1182_v58  ;;  %v1283_v1 = vld [vmem:[%s2218_s5] sm:$0xff] }
 0x16f   : > { %1191 = vst [vmem:[%s1638_s29 + $0x6] sm:$0x3] %v1183_v24  ;;  %1195 = vst [vmem:[%s1638_s29 + $0xe] sm:$0x3] %v1187_v37  ;;  %v1444_v52 = vsel %vm1202_vm4, 1.0, %v2261_v19  ;;  %vm1204_vm7 = vcmp.gt.s32.totalorder %v2254_v56, 6  ;;  %v1225_v4 = vmul.f32 %v2264_v62, %v1183_v24  ;;  %v1252_v44 = vmul.f32 %v1222_v41, %v1222_v41 }
 0x170   : > { %1192 = vst [vmem:[%s1638_s29 + $0x8] sm:$0x3] %v1184_v29  ;;  %1193 = vst [vmem:[%s1638_s29 + $0xa] sm:$0x3] %v1185_v35  ;;  %v1445_v14 = vsel %vm1203_vm5, 1.0, %v2261_v19  ;;  %v1231_v11 = vsel %vm1230_vm6, %v1222_v41, 0.0  ;;  %v1226_v8 = vmul.f32 %v1444_v52, %v1184_v29  ;;  %v1253_v23 = vmul.f32 %v1223_v17, %v1223_v17 }
 0x171   : > { %1194 = vst [vmem:[%s1638_s29 + $0xc] sm:$0x3] %v1186_v39  ;;  %v1232_v26 = vsel %vm1230_vm6, %v1223_v17, 0.0  ;;  %vm1205_vm8 = vcmp.gt.s32.totalorder %v2254_v56, 7  ;;  %v1234_v32 = vsel %vm1230_vm6, %v1224_v43, 0.0  ;;  %v1254_v25 = vmul.f32 %v1224_v43, %v1224_v43 }
 0x172   : > { %v1233_v53 = vadd.f32 %v1232_v26, %v1231_v11  ;;  %v1446_v27 = vsel %vm1204_vm7, 1.0, %v2261_v19  ;;  %v1227_v5 = vmul.f32 %v1445_v14, %v1185_v35  ;;  %v1236_v15 = vsel %vm1230_vm6, %v1225_v4, 0.0 }
 0x173   : > { %v1255_v6 = vmul.f32 %v1225_v4, %v1225_v4  ;;  %v1260_v57 = vsel %vm1230_vm6, %v1252_v44, 0.0  ;;  %v1261_v42 = vsel %vm1230_vm6, %v1253_v23, 0.0  ;;  %v1447_v56 = vsel %vm1205_vm8, 1.0, %v2261_v19  ;;  %v2265_v19 = vld [vmem:[#allocation8_spill] sm:$0xff] }
 0x174   : > { %v1235_v30 = vadd.f32 %v1234_v32, %v1233_v53  ;;  %v1262_v12 = vadd.f32 %v1261_v42, %v1260_v57  ;;  %v1228_v7 = vmul.f32 %v1446_v27, %v1186_v39  ;;  %v1238_v51 = vsel %vm1230_vm6, %v1226_v8, 0.0 }
 0x175   : > { %v1256_v20 = vmul.f32 %v1226_v8, %v1226_v8  ;;  %v1263_v3 = vsel %vm1230_vm6, %v1254_v25, 0.0  ;;  %v1229_v60 = vmul.f32 %v1447_v56, %v1187_v37  ;;  %v1240_v63 = vsel %vm1230_vm6, %v1227_v5, 0.0 }
 0x176   : > { %v1237_v50 = vadd.f32 %v1236_v15, %v1235_v30  ;;  %v1264_v22 = vadd.f32 %v1263_v3, %v1262_v12  ;;  %v1257_v28 = vmul.f32 %v1227_v5, %v1227_v5  ;;  %v1265_v47 = vsel %vm1230_vm6, %v1255_v6, 0.0 }
 0x177   : > { %v1242_v13 = vsel %vm1230_vm6, %v1228_v7, 0.0  ;;  %v1258_v0 = vmul.f32 %v1228_v7, %v1228_v7  ;;  %v1267_v2 = vsel %vm1230_vm6, %v1256_v20, 0.0  ;;  %v1244_v49 = vsel %vm1230_vm6, %v1229_v60, 0.0 }
 0x178   : > { %v1239_v55 = vadd.f32 %v1238_v51, %v1237_v50  ;;  %v1266_v18 = vadd.f32 %v1265_v47, %v1264_v22  ;;  %v1259_v31 = vmul.f32 %v1229_v60, %v1229_v60  ;;  %v1269_v16 = vsel %vm1230_vm6, %v1257_v28, 0.0 }
 0x179   : > { %v1271_v46 = vsel %vm1230_vm6, %v1258_v0, 0.0  ;;  %vm1284_vm9 = vcmp.eq.s32.totalorder %v2265_v19, 0  ;;  %vm1286_vm10 = vcmp.eq.s32.totalorder %v2265_v19, 1 }
 0x17a   : > { %v1241_v10 = vadd.f32 %v1240_v63, %v1239_v55  ;;  %v1268_v21 = vadd.f32 %v1267_v2, %v1266_v18  ;;  %v1273_v59 = vsel %vm1230_vm6, %v1259_v31, 0.0 }
 0x17c   : > { %v1243_v40 = vadd.f32 %v1242_v13, %v1241_v10  ;;  %v1270_v45 = vadd.f32 %v1269_v16, %v1268_v21 }
 0x17e   : > { %v1245_v34 = vadd.f32 %v1244_v49, %v1243_v40  ;;  %v1272_v48 = vadd.f32 %v1271_v46, %v1270_v45 }
 0x180   : > { %v1246_v36 = vrot.slane %v1245_v34, 4  ;;  %v1274_v38 = vadd.f32 %v1273_v59, %v1272_v48 }
 0x182   : > { %v1247_v54 = vadd.f32 %v1246_v36, %v1245_v34  ;;  %v1275_v58 = vrot.slane %v1274_v38, 4 }
 0x184   : > { %v1248_v9 = vrot.slane %v1247_v54, 2  ;;  %v1276_v37 = vadd.f32 %v1275_v58, %v1274_v38 }
 0x186   : > { %v1249_v24 = vadd.f32 %v1248_v9, %v1247_v54  ;;  %v1277_v35 = vrot.slane %v1276_v37, 2 }
 0x188   : > { %v1250_v29 = vrot.slane %v1249_v24, 1  ;;  %v1278_v39 = vadd.f32 %v1277_v35, %v1276_v37 }
 0x18a   : > { %v1251_v61 = vadd.f32 %v1250_v29, %v1249_v24  ;;  %v1279_v41 = vrot.slane %v1278_v39, 1 }
 0x18c   : > { %v1280_v52 = vadd.f32 %v1279_v41, %v1278_v39  ;;  %v1285_v17 = vsel %vm1284_vm9, %v1251_v61, 0.0 }
 0x18e   : > { %v1287_v33 = vsel %vm1286_vm10, %v1280_v52, 0.0 }
 0x18f   : > { %v1288_v43 = vadd.f32 %v1287_v33, %v1285_v17 }
 0x191   : > { %v1289_v14 = vadd.f32 %v1288_v43, %v1283_v1 }
 0x193   : > { %1290 = vst [vmem:[%s2218_s5] sm:$0xff] %v1289_v14 }
 0x194 PF: > { %s16_s18 = sadd.s32 1, %s1582_s18  }
 0x195   : > { %p13_p7 = scmp.ge.s32.totalorder %s16_s18, 5  }
 0x197   :  { %15 = sbr.rel (!%p13_p7) target bundleno = 1 (0x1), region = 198 }
 0x19e   :  { %1319 = vsyncmov [#allocation4] }
 0x1a1   :  { %s1320_s11 = vpop.sfrf %1319 }
 0x1a2   :  { %p1450_p8 = scmp.ne.s32.totalorder %s1320_s11, 0 }
 0x1a4   :  { %1324 = shalt.err (%p1450_p8)  }
 0x1a5   :  { %1326 = vsyncmov [#allocation4 + $0x1] }
 0x1a8   :  { %s1327_s12 = vpop.sfrf %1326 }
 0x1a9   :  { %p1451_p9 = scmp.ne.s32.totalorder %s1327_s12, 0 }
 0x1ab   :  { %1331 = shalt.err (%p1451_p9)  }

</bundles_post_ra>
